<compile_context>
chip_gen: v7x
topology: tpu7x:2x2x1
jax: 0.10.0
libtpu: 0.0.40
codegen_flags: <defaults>
</compile_context>

<pallas_src>
import functools

import jax
import jax.numpy as jnp
from jax.experimental import pallas as pl
from jax.experimental.pallas import tpu as pltpu

# ----------------------------- configuration --------------------------------
VOCAB_SIZE = 100
TYPE_VOCAB_SIZE = 2
MAX_POS = 16
HIDDEN = 32
NUM_HEADS = 2
HEAD_DIM = HIDDEN // NUM_HEADS
INTERMEDIATE = 64
NUM_LAYERS = 2
NUM_LABELS = 2
LOGIT_PAD = 128            # lane-dense padded logits width (sliced in wrapper)
OUT_ROWS = 8               # sublane-padded logits rows (>= B, multiple of 8)
LN_EPS = 1e-12


# --------------------------- shared math helpers -----------------------------
def layer_norm(x, g, b):
    mu = jnp.mean(x, axis=-1, keepdims=True)
    var = jnp.mean((x - mu) ** 2, axis=-1, keepdims=True)
    return (x - mu) * jax.lax.rsqrt(var + LN_EPS) * g + b


def gelu(x):
    # tanh-approximation GELU (numerically close to BERT's erf GELU)
    c = 0.7978845608028654  # sqrt(2/pi)
    return 0.5 * x * (1.0 + jnp.tanh(c * (x + 0.044715 * x * x * x)))


# ------------------------------ Pallas kernel --------------------------------
def bert_classifier_kernel(B, S,
                           x_ref, mask_ref, emb_ln_ref,
                           wqkv_ref, bqkv_ref, wo_ref, wi_ref, wf_ref, bi_ref,
                           vecs_ref, wc_ref, bc_ref,
                           out_ref):
    """Whole-batch BERT encoder + classifier in one grid step.

    x_ref:    (B*S, H)      f32 summed embeddings (batch folded into sublanes)
    mask_ref: (B, 1, S)     f32 additive attention mask
    wqkv_ref: (NL, H, 3H)   bf16 fused Q/K/V weights (Q pre-scaled by 1/sqrt(Dh))
    bqkv_ref: (NL, 1, 3H)   f32 fused Q/K/V bias   (Q pre-scaled by 1/sqrt(Dh))
    vecs_ref: (NL, 6, H)    f32 packed per-layer vectors: bo, ln1_g, ln1_b, bf, ln2_g, ln2_b
    out_ref:  (OUT_ROWS, LOGIT_PAD) lane/sublane-dense padded logits
    """
    h = x_ref[...]                                   # (B*S, H) f32

    # embedding LayerNorm (f32)
    emb_ln = emb_ln_ref[...]                         # (2, H)
    h = layer_norm(h, emb_ln[0:1], emb_ln[1:2])

    # additive mask broadcast once before the layer loop and reused.
    add_mask = jnp.broadcast_to(mask_ref[...], (B, S, S))      # (B, S, S) f32

    for l in range(NUM_LAYERS):          # statically unrolled over layers
        wqkv = wqkv_ref[l]               # (H, 3H) bf16 (Wq third pre-scaled)
        bqkv = bqkv_ref[l]               # (1, 3H) f32
        wo = wo_ref[l]                   # (H, H) bf16
        wi = wi_ref[l]                   # (H, I) bf16
        wf = wf_ref[l]                   # (I, H) bf16
        bi = bi_ref[l]                   # (1, I) f32
        vecs = vecs_ref[l]               # (6, H) f32
        bo, ln1_g, ln1_b = vecs[0:1], vecs[1:2], vecs[2:3]
        bf_, ln2_g, ln2_b = vecs[3:4], vecs[4:5], vecs[5:6]

        # fused QKV projection over all B*S rows: bf16 MXU operands, f32 acc.
        qkv = jnp.dot(h.astype(jnp.bfloat16), wqkv,
                      preferred_element_type=jnp.float32) + bqkv        # (B*S, 3H)
        qkv = qkv.astype(jnp.bfloat16)

        # Attention, batched over B with rank-3 einsums; heads statically
        # unrolled (NUM_HEADS == 2).
        # TODO(synk): folding the head axis into the einsum batch dim needs a
        # (B, S, NH, Dh) -> (B, NH, S, Dh) relayout (major<->sublane transpose)
        # whose Mosaic lowering is not guaranteed at these shapes; with NH=2 and
        # Dh=16 the per-head unroll costs only two extra tiny MXU pushes, so the
        # known-good form is kept.
        ctx_heads = []
        for hh in range(NUM_HEADS):
            lo = hh * HEAD_DIM
            q = qkv[:, lo:lo + HEAD_DIM].reshape(B, S, HEAD_DIM)
            k = qkv[:, HIDDEN + lo:HIDDEN + lo + HEAD_DIM].reshape(B, S, HEAD_DIM)
            v = qkv[:, 2 * HIDDEN + lo:2 * HIDDEN + lo + HEAD_DIM].reshape(B, S, HEAD_DIM)

            # 1/sqrt(Dh) already folded into Wq/bq at pack time.
            s = jnp.einsum('bqd,bkd->bqk', q, k,
                           preferred_element_type=jnp.float32) + add_mask
            s = s - jnp.max(s, axis=-1, keepdims=True)
            p = jnp.exp(s)
            p = p * pl.reciprocal(jnp.sum(p, axis=-1, keepdims=True), approx=True)
            ctx_heads.append(jnp.einsum('bqk,bkd->bqd', p.astype(jnp.bfloat16), v,
                                        preferred_element_type=jnp.float32))
        ctx = jnp.concatenate(ctx_heads, axis=-1).reshape(B * S, HIDDEN)  # (B*S, H)

        attn_out = jnp.dot(ctx.astype(jnp.bfloat16), wo,
                           preferred_element_type=jnp.float32) + bo
        h = layer_norm(h + attn_out, ln1_g, ln1_b)

        ff = gelu(jnp.dot(h.astype(jnp.bfloat16), wi,
                          preferred_element_type=jnp.float32) + bi)
        ff = jnp.dot(ff.astype(jnp.bfloat16), wf,
                     preferred_element_type=jnp.float32) + bf_
        h = layer_norm(h + ff, ln2_g, ln2_b)

    # CLS pooling: strided extraction of row 0 of every sequence (single slice,
    # no per-batch-row concat loop).
    pooled = h.reshape(B, S, HIDDEN)[:, 0:1, :].reshape(B, HIDDEN)        # (B, H)
    # Pad rows so the final store is a full unmasked (OUT_ROWS, 128) vst.
    if OUT_ROWS > B:
        pooled = jnp.concatenate(
            [pooled, jnp.zeros((OUT_ROWS - B, HIDDEN), jnp.float32)], axis=0)

    # TODO(synk): dropout is identity here (eval/inference semantics); training-
    # mode dropout would use pltpu.prng_seed / pltpu.prng_random_bits.
    # Final classifier head kept in f32 (negligible FLOPs, tightest output parity).
    logits = jnp.dot(pooled, wc_ref[...],
                     preferred_element_type=jnp.float32) + bc_ref[...]
    out_ref[...] = logits                        # single dense (OUT_ROWS, 128) store


# --------------------- one-time parameter packing (hoisted) -------------------
def pack_params(params):
    """One-time packing/casting of the 20+ parameter tensors into the handful of
    operands the kernel consumes. Called once, outside the forward path."""
    scale = 1.0 / (HEAD_DIM ** 0.5)
    wqkv = jnp.concatenate([params["wq"] * scale, params["wk"], params["wv"]],
                           axis=-1).astype(jnp.bfloat16)                    # (NL,H,3H)
    bqkv = jnp.concatenate([params["bq"] * scale, params["bk"], params["bv"]],
                           axis=-1).astype(jnp.float32)                     # (NL,1,3H)
    vecs = jnp.concatenate([params["bo"], params["ln1_g"], params["ln1_b"],
                            params["bf"], params["ln2_g"], params["ln2_b"]],
                           axis=1).astype(jnp.float32)                      # (NL,6,H)
    emb_ln = jnp.concatenate([params["emb_ln_g"], params["emb_ln_b"]], axis=0)  # (2,H)
    wc_pad = jnp.zeros((HIDDEN, LOGIT_PAD), jnp.float32).at[:, :NUM_LABELS].set(params["wc"])
    bc_pad = jnp.zeros((1, LOGIT_PAD), jnp.float32).at[:, :NUM_LABELS].set(params["bc"])
    return {
        "word_emb": params["word_emb"], "pos_emb": params["pos_emb"],
        "type_emb": params["type_emb"], "emb_ln": emb_ln,
        "wqkv": wqkv, "bqkv": bqkv,
        "wo": params["wo"].astype(jnp.bfloat16),
        "wi": params["wi"].astype(jnp.bfloat16),
        "wf": params["wf"].astype(jnp.bfloat16),
        "bi": params["bi"].astype(jnp.float32),
        "vecs": vecs, "wc": wc_pad, "bc": bc_pad,
    }


# ------------------------------ wrapper (glue) --------------------------------
@jax.jit
def evidence_classifier(packed, input_ids, attention_mask, token_type_ids):
    B, S = input_ids.shape

    # embedding gathers stay in plain JAX (glue)
    emb = (packed["word_emb"][input_ids]
           + packed["pos_emb"][None, :S, :]
           + packed["type_emb"][token_type_ids]).astype(jnp.float32)           # (B, S, H)
    x = emb.reshape(B * S, HIDDEN)                                             # (B*S, H)
    add_mask = ((1.0 - attention_mask.astype(jnp.float32)) * -1e9)[:, None, :]  # (B, 1, S)

    operands = [x, add_mask, packed["emb_ln"], packed["wqkv"], packed["bqkv"],
                packed["wo"], packed["wi"], packed["wf"], packed["bi"],
                packed["vecs"], packed["wc"], packed["bc"]]

    def full_spec(a):
        return pl.BlockSpec(a.shape, lambda i, n=a.ndim: (0,) * n)

    # Whole problem in one grid step: ~100 KB of operands, far below every
    # generation's VMEM budget (incl. v7x's 64 MiB), so no vmem_limit override.
    # TODO(synk): for real batch sizes add a leading "parallel" batch grid axis
    # (uses v7x's second TensorCore) and a layer-indexed grid axis so weight DMA
    # double-buffers behind compute once NUM_LAYERS grows.
    out = pl.pallas_call(
        functools.partial(bert_classifier_kernel, B, S),
        out_shape=jax.ShapeDtypeStruct((OUT_ROWS, LOGIT_PAD), jnp.float32),
        grid=(1,),                               # whole batch in one grid step
        in_specs=[full_spec(a) for a in operands],
        out_specs=pl.BlockSpec((OUT_ROWS, LOGIT_PAD), lambda i: (0, 0)),
        compiler_params=pltpu.CompilerParams(dimension_semantics=("arbitrary",)),
    )(*operands)

    return out[:B, :NUM_LABELS]                  # (B, NUM_LABELS)


# ----------------------------- pure-JAX reference -----------------------------
def reference_encoder_layer(h, add_mask, wq, bq, wk, bk, wv, bv, wo, bo,
                            ln1_g, ln1_b, wi, bi, wf, bf, ln2_g, ln2_b):
    q = jnp.dot(h, wq) + bq
    k = jnp.dot(h, wk) + bk
    v = jnp.dot(h, wv) + bv
    scale = 1.0 / (HEAD_DIM ** 0.5)
    heads = []
    for hh in range(NUM_HEADS):
        sl = slice(hh * HEAD_DIM, (hh + 1) * HEAD_DIM)
        qh, kh, vh = q[:, sl], k[:, sl], v[:, sl]
        s = jnp.dot(qh, kh.T) * scale + add_mask
        s = s - jnp.max(s, axis=-1, keepdims=True)
        p = jnp.exp(s)
        p = p / jnp.sum(p, axis=-1, keepdims=True)
        heads.append(jnp.dot(p, vh))
    ctx = jnp.concatenate(heads, axis=-1)
    attn_out = jnp.dot(ctx, wo) + bo
    h = layer_norm(h + attn_out, ln1_g, ln1_b)
    ff = gelu(jnp.dot(h, wi) + bi)
    ff = jnp.dot(ff, wf) + bf
    h = layer_norm(h + ff, ln2_g, ln2_b)
    return h


def reference_forward(params, input_ids, attention_mask, token_type_ids):
    B, S = input_ids.shape
    emb = (params["word_emb"][input_ids]
           + params["pos_emb"][None, :S, :]
           + params["type_emb"][token_type_ids]).astype(jnp.float32)
    add_mask = ((1.0 - attention_mask.astype(jnp.float32)) * -1e9)[:, None, :]

    outs = []
    for b in range(B):
        h = layer_norm(emb[b], params["emb_ln_g"], params["emb_ln_b"])
        m = add_mask[b]
        for l in range(NUM_LAYERS):
            h = reference_encoder_layer(
                h, m,
                params["wq"][l], params["bq"][l], params["wk"][l], params["bk"][l],
                params["wv"][l], params["bv"][l], params["wo"][l], params["bo"][l],
                params["ln1_g"][l], params["ln1_b"][l],
                params["wi"][l], params["bi"][l], params["wf"][l], params["bf"][l],
                params["ln2_g"][l], params["ln2_b"][l])
        pooled = h[0:1, :]
        outs.append(jnp.dot(pooled, params["wc"]) + params["bc"])
    return jnp.concatenate(outs, axis=0)


# ------------------------------- parameter init --------------------------------
def init_params(key):
    def nrm(k, shape, scale=0.02):
        return scale * jax.random.normal(k, shape, dtype=jnp.float32)

    ks = iter(jax.random.split(key, 16))
    p = {}
    p["word_emb"] = nrm(next(ks), (VOCAB_SIZE, HIDDEN))
    p["pos_emb"] = nrm(next(ks), (MAX_POS, HIDDEN))
    p["type_emb"] = nrm(next(ks), (TYPE_VOCAB_SIZE, HIDDEN))
    p["emb_ln_g"] = jnp.ones((1, HIDDEN), jnp.float32)
    p["emb_ln_b"] = jnp.zeros((1, HIDDEN), jnp.float32)

    p["wq"] = nrm(next(ks), (NUM_LAYERS, HIDDEN, HIDDEN))
    p["bq"] = jnp.zeros((NUM_LAYERS, 1, HIDDEN), jnp.float32)
    p["wk"] = nrm(next(ks), (NUM_LAYERS, HIDDEN, HIDDEN))
    p["bk"] = jnp.zeros((NUM_LAYERS, 1, HIDDEN), jnp.float32)
    p["wv"] = nrm(next(ks), (NUM_LAYERS, HIDDEN, HIDDEN))
    p["bv"] = jnp.zeros((NUM_LAYERS, 1, HIDDEN), jnp.float32)
    p["wo"] = nrm(next(ks), (NUM_LAYERS, HIDDEN, HIDDEN))
    p["bo"] = jnp.zeros((NUM_LAYERS, 1, HIDDEN), jnp.float32)
    p["ln1_g"] = jnp.ones((NUM_LAYERS, 1, HIDDEN), jnp.float32)
    p["ln1_b"] = jnp.zeros((NUM_LAYERS, 1, HIDDEN), jnp.float32)

    p["wi"] = nrm(next(ks), (NUM_LAYERS, HIDDEN, INTERMEDIATE))
    p["bi"] = jnp.zeros((NUM_LAYERS, 1, INTERMEDIATE), jnp.float32)
    p["wf"] = nrm(next(ks), (NUM_LAYERS, INTERMEDIATE, HIDDEN))
    p["bf"] = jnp.zeros((NUM_LAYERS, 1, HIDDEN), jnp.float32)
    p["ln2_g"] = jnp.ones((NUM_LAYERS, 1, HIDDEN), jnp.float32)
    p["ln2_b"] = jnp.zeros((NUM_LAYERS, 1, HIDDEN), jnp.float32)

    p["wc"] = nrm(next(ks), (HIDDEN, NUM_LABELS))
    p["bc"] = jnp.zeros((1, NUM_LABELS), jnp.float32)
    return p


# ----------------------------------- main --------------------------------------
if __name__ == "__main__":
    key = jax.random.PRNGKey(0)
    pkey, ikey = jax.random.split(key, 2)
    params = init_params(pkey)
    packed = pack_params(params)     # one-time pack/cast, hoisted out of the forward

    B, S = 2, 8
    input_ids = jax.random.randint(ikey, (B, S), 0, VOCAB_SIZE, dtype=jnp.int32)
    attention_mask = jnp.array([[1] * S, [1] * (S - 2) + [0] * 2], dtype=jnp.int32)
    token_type_ids = jnp.zeros((B, S), dtype=jnp.int32)

    logits = evidence_classifier(packed, input_ids, attention_mask, token_type_ids)
    logits = jax.block_until_ready(logits)

    ref = reference_forward(params, input_ids, attention_mask, token_type_ids)
    assert logits.shape == (B, NUM_LABELS)
    # bf16 MXU operands (f32 accumulation, f32 LN/softmax/GELU/residuals) plus the
    # approximate EUP reciprocal in softmax -> compare at 2e-3.
    assert jnp.allclose(logits, ref, rtol=2e-3, atol=2e-3), (logits, ref)

    print("KERNEL_OK")
</pallas_src>

<mosaic_0001>
module attributes {stable_mosaic.version = 11 : i64} {
  func.func @bert_classifier_kernel(%arg0: i32, %arg1: memref<16x32xf32, #tpu.memory_space<vmem>>, %arg2: memref<2x1x8xf32, #tpu.memory_space<vmem>>, %arg3: memref<2x32xf32, #tpu.memory_space<vmem>>, %arg4: memref<2x32x96xbf16, #tpu.memory_space<vmem>>, %arg5: memref<2x1x96xf32, #tpu.memory_space<vmem>>, %arg6: memref<2x32x32xbf16, #tpu.memory_space<vmem>>, %arg7: memref<2x32x64xbf16, #tpu.memory_space<vmem>>, %arg8: memref<2x64x32xbf16, #tpu.memory_space<vmem>>, %arg9: memref<2x1x64xf32, #tpu.memory_space<vmem>>, %arg10: memref<2x6x32xf32, #tpu.memory_space<vmem>>, %arg11: memref<32x128xf32, #tpu.memory_space<vmem>>, %arg12: memref<1x128xf32, #tpu.memory_space<vmem>>, %arg13: memref<8x128xf32, #tpu.memory_space<vmem>>) attributes {dimension_semantics = [#tpu.dimension_semantics<arbitrary>], iteration_bounds = array<i64: 1>, scalar_prefetch = 0 : i64, scratch_operands = 0 : i64, tpu.core_type = #tpu.core_type<tc>, window_params = [{pipeline_mode = #tpu.pipeline_mode<synchronous>, transform_indices = @transform_0, window_bounds = array<i64: 16, 32>}, {pipeline_mode = #tpu.pipeline_mode<synchronous>, transform_indices = @transform_1, window_bounds = array<i64: 2, 1, 8>}, {pipeline_mode = #tpu.pipeline_mode<synchronous>, transform_indices = @transform_2, window_bounds = array<i64: 2, 32>}, {pipeline_mode = #tpu.pipeline_mode<synchronous>, transform_indices = @transform_3, window_bounds = array<i64: 2, 32, 96>}, {pipeline_mode = #tpu.pipeline_mode<synchronous>, transform_indices = @transform_4, window_bounds = array<i64: 2, 1, 96>}, {pipeline_mode = #tpu.pipeline_mode<synchronous>, transform_indices = @transform_5, window_bounds = array<i64: 2, 32, 32>}, {pipeline_mode = #tpu.pipeline_mode<synchronous>, transform_indices = @transform_6, window_bounds = array<i64: 2, 32, 64>}, {pipeline_mode = #tpu.pipeline_mode<synchronous>, transform_indices = @transform_7, window_bounds = array<i64: 2, 64, 32>}, {pipeline_mode = #tpu.pipeline_mode<synchronous>, transform_indices = @transform_8, window_bounds = array<i64: 2, 1, 64>}, {pipeline_mode = #tpu.pipeline_mode<synchronous>, transform_indices = @transform_9, window_bounds = array<i64: 2, 6, 32>}, {pipeline_mode = #tpu.pipeline_mode<synchronous>, transform_indices = @transform_10, window_bounds = array<i64: 32, 128>}, {pipeline_mode = #tpu.pipeline_mode<synchronous>, transform_indices = @transform_11, window_bounds = array<i64: 1, 128>}, {pipeline_mode = #tpu.pipeline_mode<synchronous>, transform_indices = @transform_12, window_bounds = array<i64: 8, 128>}]} {
    %c0 = arith.constant 0 : index
    %c0_0 = arith.constant 0 : index
    %0 = vector.load %arg1[%c0, %c0_0] : memref<16x32xf32, #tpu.memory_space<vmem>>, vector<16x32xf32>
    %c0_1 = arith.constant 0 : index
    %c0_2 = arith.constant 0 : index
    %1 = vector.load %arg3[%c0_1, %c0_2] : memref<2x32xf32, #tpu.memory_space<vmem>>, vector<2x32xf32>
    %2 = vector.extract_strided_slice %1 {offsets = [0, 0], sizes = [1, 32], strides = [1, 1]} : vector<2x32xf32> to vector<1x32xf32>
    %3 = vector.extract_strided_slice %1 {offsets = [1, 0], sizes = [1, 32], strides = [1, 1]} : vector<2x32xf32> to vector<1x32xf32>
    %cst = arith.constant dense<0.000000e+00> : vector<16xf32>
    %4 = vector.multi_reduction <add>, %0, %cst [1] : vector<16x32xf32> to vector<16xf32>
    %5 = vector.shape_cast %4 : vector<16xf32> to vector<16x1xf32>
    %cst_3 = arith.constant 3.200000e+01 : f32
    %6 = vector.broadcast %cst_3 : f32 to vector<16x1xf32>
    %7 = arith.divf %5, %6 : vector<16x1xf32>
    %8 = vector.broadcast %7 : vector<16x1xf32> to vector<16x32xf32>
    %9 = arith.subf %0, %8 : vector<16x32xf32>
    %10 = arith.mulf %9, %9 : vector<16x32xf32>
    %cst_4 = arith.constant dense<0.000000e+00> : vector<16xf32>
    %11 = vector.multi_reduction <add>, %10, %cst_4 [1] : vector<16x32xf32> to vector<16xf32>
    %12 = vector.shape_cast %11 : vector<16xf32> to vector<16x1xf32>
    %cst_5 = arith.constant 3.200000e+01 : f32
    %13 = vector.broadcast %cst_5 : f32 to vector<16x1xf32>
    %14 = arith.divf %12, %13 : vector<16x1xf32>
    %15 = vector.broadcast %7 : vector<16x1xf32> to vector<16x32xf32>
    %16 = arith.subf %0, %15 : vector<16x32xf32>
    %cst_6 = arith.constant 9.99999996E-13 : f32
    %17 = vector.broadcast %cst_6 : f32 to vector<16x1xf32>
    %18 = arith.addf %14, %17 : vector<16x1xf32>
    %19 = math.rsqrt %18 : vector<16x1xf32>
    %20 = vector.broadcast %19 : vector<16x1xf32> to vector<16x32xf32>
    %21 = arith.mulf %16, %20 : vector<16x32xf32>
    %22 = vector.broadcast %2 : vector<1x32xf32> to vector<16x32xf32>
    %23 = arith.mulf %21, %22 : vector<16x32xf32>
    %24 = vector.broadcast %3 : vector<1x32xf32> to vector<16x32xf32>
    %25 = arith.addf %23, %24 : vector<16x32xf32>
    %c0_7 = arith.constant 0 : index
    %c0_8 = arith.constant 0 : index
    %c0_9 = arith.constant 0 : index
    %26 = vector.load %arg2[%c0_7, %c0_8, %c0_9] : memref<2x1x8xf32, #tpu.memory_space<vmem>>, vector<2x1x8xf32>
    %27 = vector.shape_cast %26 : vector<2x1x8xf32> to vector<2x1x8xf32>
    %28 = vector.broadcast %27 : vector<2x1x8xf32> to vector<2x8x8xf32>
    %c0_10 = arith.constant 0 : index
    %c0_11 = arith.constant 0 : index
    %c0_12 = arith.constant 0 : index
    %29 = vector.load %arg4[%c0_10, %c0_11, %c0_12] : memref<2x32x96xbf16, #tpu.memory_space<vmem>>, vector<1x32x96xbf16>
    %30 = vector.shape_cast %29 : vector<1x32x96xbf16> to vector<32x96xbf16>
    %c0_13 = arith.constant 0 : index
    %c0_14 = arith.constant 0 : index
    %c0_15 = arith.constant 0 : index
    %31 = vector.load %arg5[%c0_13, %c0_14, %c0_15] : memref<2x1x96xf32, #tpu.memory_space<vmem>>, vector<1x1x96xf32>
    %32 = vector.shape_cast %31 : vector<1x1x96xf32> to vector<1x96xf32>
    %c0_16 = arith.constant 0 : index
    %c0_17 = arith.constant 0 : index
    %c0_18 = arith.constant 0 : index
    %33 = vector.load %arg6[%c0_16, %c0_17, %c0_18] : memref<2x32x32xbf16, #tpu.memory_space<vmem>>, vector<1x32x32xbf16>
    %34 = vector.shape_cast %33 : vector<1x32x32xbf16> to vector<32x32xbf16>
    %c0_19 = arith.constant 0 : index
    %c0_20 = arith.constant 0 : index
    %c0_21 = arith.constant 0 : index
    %35 = vector.load %arg7[%c0_19, %c0_20, %c0_21] : memref<2x32x64xbf16, #tpu.memory_space<vmem>>, vector<1x32x64xbf16>
    %36 = vector.shape_cast %35 : vector<1x32x64xbf16> to vector<32x64xbf16>
    %c0_22 = arith.constant 0 : index
    %c0_23 = arith.constant 0 : index
    %c0_24 = arith.constant 0 : index
    %37 = vector.load %arg8[%c0_22, %c0_23, %c0_24] : memref<2x64x32xbf16, #tpu.memory_space<vmem>>, vector<1x64x32xbf16>
    %38 = vector.shape_cast %37 : vector<1x64x32xbf16> to vector<64x32xbf16>
    %c0_25 = arith.constant 0 : index
    %c0_26 = arith.constant 0 : index
    %c0_27 = arith.constant 0 : index
    %39 = vector.load %arg9[%c0_25, %c0_26, %c0_27] : memref<2x1x64xf32, #tpu.memory_space<vmem>>, vector<1x1x64xf32>
    %40 = vector.shape_cast %39 : vector<1x1x64xf32> to vector<1x64xf32>
    %c0_28 = arith.constant 0 : index
    %c0_29 = arith.constant 0 : index
    %c0_30 = arith.constant 0 : index
    %41 = vector.load %arg10[%c0_28, %c0_29, %c0_30] : memref<2x6x32xf32, #tpu.memory_space<vmem>>, vector<1x6x32xf32>
    %42 = vector.shape_cast %41 : vector<1x6x32xf32> to vector<6x32xf32>
    %43 = vector.extract_strided_slice %42 {offsets = [0, 0], sizes = [1, 32], strides = [1, 1]} : vector<6x32xf32> to vector<1x32xf32>
    %44 = vector.extract_strided_slice %42 {offsets = [1, 0], sizes = [1, 32], strides = [1, 1]} : vector<6x32xf32> to vector<1x32xf32>
    %45 = vector.extract_strided_slice %42 {offsets = [2, 0], sizes = [1, 32], strides = [1, 1]} : vector<6x32xf32> to vector<1x32xf32>
    %46 = vector.extract_strided_slice %42 {offsets = [3, 0], sizes = [1, 32], strides = [1, 1]} : vector<6x32xf32> to vector<1x32xf32>
    %47 = vector.extract_strided_slice %42 {offsets = [4, 0], sizes = [1, 32], strides = [1, 1]} : vector<6x32xf32> to vector<1x32xf32>
    %48 = vector.extract_strided_slice %42 {offsets = [5, 0], sizes = [1, 32], strides = [1, 1]} : vector<6x32xf32> to vector<1x32xf32>
    %49 = arith.truncf %25 : vector<16x32xf32> to vector<16x32xbf16>
    %cst_31 = arith.constant dense<0.000000e+00> : vector<16x96xf32>
    %50 = tpu.matmul %49, %30, %cst_31 {dimension_numbers = #tpu.dot_dimension_numbers<[1], [0], [0], [1], [0, 0, 1, 1], [], []>} : vector<16x32xbf16>, vector<32x96xbf16>, vector<16x96xf32> -> vector<16x96xf32>
    %51 = vector.broadcast %32 : vector<1x96xf32> to vector<16x96xf32>
    %52 = arith.addf %50, %51 : vector<16x96xf32>
    %53 = arith.truncf %52 : vector<16x96xf32> to vector<16x96xbf16>
    %54 = vector.extract_strided_slice %53 {offsets = [0, 0], sizes = [16, 16], strides = [1, 1]} : vector<16x96xbf16> to vector<16x16xbf16>
    %55 = vector.shape_cast %54 : vector<16x16xbf16> to vector<2x8x16xbf16>
    %56 = vector.extract_strided_slice %53 {offsets = [0, 32], sizes = [16, 16], strides = [1, 1]} : vector<16x96xbf16> to vector<16x16xbf16>
    %57 = vector.shape_cast %56 : vector<16x16xbf16> to vector<2x8x16xbf16>
    %58 = vector.extract_strided_slice %53 {offsets = [0, 64], sizes = [16, 16], strides = [1, 1]} : vector<16x96xbf16> to vector<16x16xbf16>
    %59 = vector.shape_cast %58 : vector<16x16xbf16> to vector<2x8x16xbf16>
    "tpu.trace_start"() <{level = 10 : i32, message = "bqd,bkd->bqk"}> : () -> ()
    %cst_32 = arith.constant dense<0.000000e+00> : vector<2x8x8xf32>
    %60 = tpu.matmul %55, %57, %cst_32 {dimension_numbers = #tpu.dot_dimension_numbers<[2], [2], [1], [1], [0, 0, 0, 1, 1, 1], [0], [0]>} : vector<2x8x16xbf16>, vector<2x8x16xbf16>, vector<2x8x8xf32> -> vector<2x8x8xf32>
    "tpu.trace_stop"() : () -> ()
    %61 = arith.addf %60, %28 : vector<2x8x8xf32>
    %cst_33 = arith.constant dense<0xFF800000> : vector<2x8xf32>
    %62 = vector.multi_reduction <maximumf>, %61, %cst_33 [2] : vector<2x8x8xf32> to vector<2x8xf32>
    %63 = vector.shape_cast %62 : vector<2x8xf32> to vector<2x8x1xf32>
    %64 = vector.broadcast %63 : vector<2x8x1xf32> to vector<2x8x8xf32>
    %65 = arith.subf %61, %64 : vector<2x8x8xf32>
    %66 = math.exp %65 : vector<2x8x8xf32>
    %cst_34 = arith.constant dense<0.000000e+00> : vector<2x8xf32>
    %67 = vector.multi_reduction <add>, %66, %cst_34 [2] : vector<2x8x8xf32> to vector<2x8xf32>
    %68 = vector.shape_cast %67 : vector<2x8xf32> to vector<2x8x1xf32>
    %69 = tpu.reciprocal %68 {approx = true} : vector<2x8x1xf32> -> vector<2x8x1xf32>
    %70 = vector.broadcast %69 : vector<2x8x1xf32> to vector<2x8x8xf32>
    %71 = arith.mulf %66, %70 : vector<2x8x8xf32>
    %72 = arith.truncf %71 : vector<2x8x8xf32> to vector<2x8x8xbf16>
    "tpu.trace_start"() <{level = 10 : i32, message = "bqk,bkd->bqd"}> : () -> ()
    %cst_35 = arith.constant dense<0.000000e+00> : vector<2x8x16xf32>
    %73 = tpu.matmul %72, %59, %cst_35 {dimension_numbers = #tpu.dot_dimension_numbers<[2], [1], [1], [2], [0, 0, 0, 1, 1, 2], [0], [0]>} : vector<2x8x8xbf16>, vector<2x8x16xbf16>, vector<2x8x16xf32> -> vector<2x8x16xf32>
    "tpu.trace_stop"() : () -> ()
    %74 = vector.extract_strided_slice %53 {offsets = [0, 16], sizes = [16, 16], strides = [1, 1]} : vector<16x96xbf16> to vector<16x16xbf16>
    %75 = vector.shape_cast %74 : vector<16x16xbf16> to vector<2x8x16xbf16>
    %76 = vector.extract_strided_slice %53 {offsets = [0, 48], sizes = [16, 16], strides = [1, 1]} : vector<16x96xbf16> to vector<16x16xbf16>
    %77 = vector.shape_cast %76 : vector<16x16xbf16> to vector<2x8x16xbf16>
    %78 = vector.extract_strided_slice %53 {offsets = [0, 80], sizes = [16, 16], strides = [1, 1]} : vector<16x96xbf16> to vector<16x16xbf16>
    %79 = vector.shape_cast %78 : vector<16x16xbf16> to vector<2x8x16xbf16>
    "tpu.trace_start"() <{level = 10 : i32, message = "bqd,bkd->bqk"}> : () -> ()
    %cst_36 = arith.constant dense<0.000000e+00> : vector<2x8x8xf32>
    %80 = tpu.matmul %75, %77, %cst_36 {dimension_numbers = #tpu.dot_dimension_numbers<[2], [2], [1], [1], [0, 0, 0, 1, 1, 1], [0], [0]>} : vector<2x8x16xbf16>, vector<2x8x16xbf16>, vector<2x8x8xf32> -> vector<2x8x8xf32>
    "tpu.trace_stop"() : () -> ()
    %81 = arith.addf %80, %28 : vector<2x8x8xf32>
    %cst_37 = arith.constant dense<0xFF800000> : vector<2x8xf32>
    %82 = vector.multi_reduction <maximumf>, %81, %cst_37 [2] : vector<2x8x8xf32> to vector<2x8xf32>
    %83 = vector.shape_cast %82 : vector<2x8xf32> to vector<2x8x1xf32>
    %84 = vector.broadcast %83 : vector<2x8x1xf32> to vector<2x8x8xf32>
    %85 = arith.subf %81, %84 : vector<2x8x8xf32>
    %86 = math.exp %85 : vector<2x8x8xf32>
    %cst_38 = arith.constant dense<0.000000e+00> : vector<2x8xf32>
    %87 = vector.multi_reduction <add>, %86, %cst_38 [2] : vector<2x8x8xf32> to vector<2x8xf32>
    %88 = vector.shape_cast %87 : vector<2x8xf32> to vector<2x8x1xf32>
    %89 = tpu.reciprocal %88 {approx = true} : vector<2x8x1xf32> -> vector<2x8x1xf32>
    %90 = vector.broadcast %89 : vector<2x8x1xf32> to vector<2x8x8xf32>
    %91 = arith.mulf %86, %90 : vector<2x8x8xf32>
    %92 = arith.truncf %91 : vector<2x8x8xf32> to vector<2x8x8xbf16>
    "tpu.trace_start"() <{level = 10 : i32, message = "bqk,bkd->bqd"}> : () -> ()
    %cst_39 = arith.constant dense<0.000000e+00> : vector<2x8x16xf32>
    %93 = tpu.matmul %92, %79, %cst_39 {dimension_numbers = #tpu.dot_dimension_numbers<[2], [1], [1], [2], [0, 0, 0, 1, 1, 2], [0], [0]>} : vector<2x8x8xbf16>, vector<2x8x16xbf16>, vector<2x8x16xf32> -> vector<2x8x16xf32>
    "tpu.trace_stop"() : () -> ()
    %94 = tpu.concatenate %73, %93 in 2 : vector<2x8x16xf32>, vector<2x8x16xf32> -> vector<2x8x32xf32>
    %95 = vector.shape_cast %94 : vector<2x8x32xf32> to vector<16x32xf32>
    %96 = arith.truncf %95 : vector<16x32xf32> to vector<16x32xbf16>
    %cst_40 = arith.constant dense<0.000000e+00> : vector<16x32xf32>
    %97 = tpu.matmul %96, %34, %cst_40 {dimension_numbers = #tpu.dot_dimension_numbers<[1], [0], [0], [1], [0, 0, 1, 1], [], []>} : vector<16x32xbf16>, vector<32x32xbf16>, vector<16x32xf32> -> vector<16x32xf32>
    %98 = vector.broadcast %43 : vector<1x32xf32> to vector<16x32xf32>
    %99 = arith.addf %97, %98 : vector<16x32xf32>
    %100 = arith.addf %25, %99 : vector<16x32xf32>
    %cst_41 = arith.constant dense<0.000000e+00> : vector<16xf32>
    %101 = vector.multi_reduction <add>, %100, %cst_41 [1] : vector<16x32xf32> to vector<16xf32>
    %102 = vector.shape_cast %101 : vector<16xf32> to vector<16x1xf32>
    %cst_42 = arith.constant 3.200000e+01 : f32
    %103 = vector.broadcast %cst_42 : f32 to vector<16x1xf32>
    %104 = arith.divf %102, %103 : vector<16x1xf32>
    %105 = vector.broadcast %104 : vector<16x1xf32> to vector<16x32xf32>
    %106 = arith.subf %100, %105 : vector<16x32xf32>
    %107 = arith.mulf %106, %106 : vector<16x32xf32>
    %cst_43 = arith.constant dense<0.000000e+00> : vector<16xf32>
    %108 = vector.multi_reduction <add>, %107, %cst_43 [1] : vector<16x32xf32> to vector<16xf32>
    %109 = vector.shape_cast %108 : vector<16xf32> to vector<16x1xf32>
    %cst_44 = arith.constant 3.200000e+01 : f32
    %110 = vector.broadcast %cst_44 : f32 to vector<16x1xf32>
    %111 = arith.divf %109, %110 : vector<16x1xf32>
    %112 = vector.broadcast %104 : vector<16x1xf32> to vector<16x32xf32>
    %113 = arith.subf %100, %112 : vector<16x32xf32>
    %cst_45 = arith.constant 9.99999996E-13 : f32
    %114 = vector.broadcast %cst_45 : f32 to vector<16x1xf32>
    %115 = arith.addf %111, %114 : vector<16x1xf32>
    %116 = math.rsqrt %115 : vector<16x1xf32>
    %117 = vector.broadcast %116 : vector<16x1xf32> to vector<16x32xf32>
    %118 = arith.mulf %113, %117 : vector<16x32xf32>
    %119 = vector.broadcast %44 : vector<1x32xf32> to vector<16x32xf32>
    %120 = arith.mulf %118, %119 : vector<16x32xf32>
    %121 = vector.broadcast %45 : vector<1x32xf32> to vector<16x32xf32>
    %122 = arith.addf %120, %121 : vector<16x32xf32>
    %123 = arith.truncf %122 : vector<16x32xf32> to vector<16x32xbf16>
    %cst_46 = arith.constant dense<0.000000e+00> : vector<16x64xf32>
    %124 = tpu.matmul %123, %36, %cst_46 {dimension_numbers = #tpu.dot_dimension_numbers<[1], [0], [0], [1], [0, 0, 1, 1], [], []>} : vector<16x32xbf16>, vector<32x64xbf16>, vector<16x64xf32> -> vector<16x64xf32>
    %125 = vector.broadcast %40 : vector<1x64xf32> to vector<16x64xf32>
    %126 = arith.addf %124, %125 : vector<16x64xf32>
    %cst_47 = arith.constant 5.000000e-01 : f32
    %127 = vector.broadcast %cst_47 : f32 to vector<16x64xf32>
    %128 = arith.mulf %127, %126 : vector<16x64xf32>
    %cst_48 = arith.constant 4.471500e-02 : f32
    %129 = vector.broadcast %cst_48 : f32 to vector<16x64xf32>
    %130 = arith.mulf %129, %126 : vector<16x64xf32>
    %131 = arith.mulf %130, %126 : vector<16x64xf32>
    %132 = arith.mulf %131, %126 : vector<16x64xf32>
    %133 = arith.addf %126, %132 : vector<16x64xf32>
    %cst_49 = arith.constant 0.797884583 : f32
    %134 = vector.broadcast %cst_49 : f32 to vector<16x64xf32>
    %135 = arith.mulf %134, %133 : vector<16x64xf32>
    %136 = math.tanh %135 : vector<16x64xf32>
    %cst_50 = arith.constant 1.000000e+00 : f32
    %137 = vector.broadcast %cst_50 : f32 to vector<16x64xf32>
    %138 = arith.addf %137, %136 : vector<16x64xf32>
    %139 = arith.mulf %128, %138 : vector<16x64xf32>
    %140 = arith.truncf %139 : vector<16x64xf32> to vector<16x64xbf16>
    %cst_51 = arith.constant dense<0.000000e+00> : vector<16x32xf32>
    %141 = tpu.matmul %140, %38, %cst_51 {dimension_numbers = #tpu.dot_dimension_numbers<[1], [0], [0], [1], [0, 0, 1, 1], [], []>} : vector<16x64xbf16>, vector<64x32xbf16>, vector<16x32xf32> -> vector<16x32xf32>
    %142 = vector.broadcast %46 : vector<1x32xf32> to vector<16x32xf32>
    %143 = arith.addf %141, %142 : vector<16x32xf32>
    %144 = arith.addf %122, %143 : vector<16x32xf32>
    %cst_52 = arith.constant dense<0.000000e+00> : vector<16xf32>
    %145 = vector.multi_reduction <add>, %144, %cst_52 [1] : vector<16x32xf32> to vector<16xf32>
    %146 = vector.shape_cast %145 : vector<16xf32> to vector<16x1xf32>
    %cst_53 = arith.constant 3.200000e+01 : f32
    %147 = vector.broadcast %cst_53 : f32 to vector<16x1xf32>
    %148 = arith.divf %146, %147 : vector<16x1xf32>
    %149 = vector.broadcast %148 : vector<16x1xf32> to vector<16x32xf32>
    %150 = arith.subf %144, %149 : vector<16x32xf32>
    %151 = arith.mulf %150, %150 : vector<16x32xf32>
    %cst_54 = arith.constant dense<0.000000e+00> : vector<16xf32>
    %152 = vector.multi_reduction <add>, %151, %cst_54 [1] : vector<16x32xf32> to vector<16xf32>
    %153 = vector.shape_cast %152 : vector<16xf32> to vector<16x1xf32>
    %cst_55 = arith.constant 3.200000e+01 : f32
    %154 = vector.broadcast %cst_55 : f32 to vector<16x1xf32>
    %155 = arith.divf %153, %154 : vector<16x1xf32>
    %156 = vector.broadcast %148 : vector<16x1xf32> to vector<16x32xf32>
    %157 = arith.subf %144, %156 : vector<16x32xf32>
    %cst_56 = arith.constant 9.99999996E-13 : f32
    %158 = vector.broadcast %cst_56 : f32 to vector<16x1xf32>
    %159 = arith.addf %155, %158 : vector<16x1xf32>
    %160 = math.rsqrt %159 : vector<16x1xf32>
    %161 = vector.broadcast %160 : vector<16x1xf32> to vector<16x32xf32>
    %162 = arith.mulf %157, %161 : vector<16x32xf32>
    %163 = vector.broadcast %47 : vector<1x32xf32> to vector<16x32xf32>
    %164 = arith.mulf %162, %163 : vector<16x32xf32>
    %165 = vector.broadcast %48 : vector<1x32xf32> to vector<16x32xf32>
    %166 = arith.addf %164, %165 : vector<16x32xf32>
    %c1 = arith.constant 1 : index
    %c0_57 = arith.constant 0 : index
    %c0_58 = arith.constant 0 : index
    %167 = vector.load %arg4[%c1, %c0_57, %c0_58] : memref<2x32x96xbf16, #tpu.memory_space<vmem>>, vector<1x32x96xbf16>
    %168 = vector.shape_cast %167 : vector<1x32x96xbf16> to vector<32x96xbf16>
    %c1_59 = arith.constant 1 : index
    %c0_60 = arith.constant 0 : index
    %c0_61 = arith.constant 0 : index
    %169 = vector.load %arg5[%c1_59, %c0_60, %c0_61] : memref<2x1x96xf32, #tpu.memory_space<vmem>>, vector<1x1x96xf32>
    %170 = vector.shape_cast %169 : vector<1x1x96xf32> to vector<1x96xf32>
    %c1_62 = arith.constant 1 : index
    %c0_63 = arith.constant 0 : index
    %c0_64 = arith.constant 0 : index
    %171 = vector.load %arg6[%c1_62, %c0_63, %c0_64] : memref<2x32x32xbf16, #tpu.memory_space<vmem>>, vector<1x32x32xbf16>
    %172 = vector.shape_cast %171 : vector<1x32x32xbf16> to vector<32x32xbf16>
    %c1_65 = arith.constant 1 : index
    %c0_66 = arith.constant 0 : index
    %c0_67 = arith.constant 0 : index
    %173 = vector.load %arg7[%c1_65, %c0_66, %c0_67] : memref<2x32x64xbf16, #tpu.memory_space<vmem>>, vector<1x32x64xbf16>
    %174 = vector.shape_cast %173 : vector<1x32x64xbf16> to vector<32x64xbf16>
    %c1_68 = arith.constant 1 : index
    %c0_69 = arith.constant 0 : index
    %c0_70 = arith.constant 0 : index
    %175 = vector.load %arg8[%c1_68, %c0_69, %c0_70] : memref<2x64x32xbf16, #tpu.memory_space<vmem>>, vector<1x64x32xbf16>
    %176 = vector.shape_cast %175 : vector<1x64x32xbf16> to vector<64x32xbf16>
    %c1_71 = arith.constant 1 : index
    %c0_72 = arith.constant 0 : index
    %c0_73 = arith.constant 0 : index
    %177 = vector.load %arg9[%c1_71, %c0_72, %c0_73] : memref<2x1x64xf32, #tpu.memory_space<vmem>>, vector<1x1x64xf32>
    %178 = vector.shape_cast %177 : vector<1x1x64xf32> to vector<1x64xf32>
    %c1_74 = arith.constant 1 : index
    %c0_75 = arith.constant 0 : index
    %c0_76 = arith.constant 0 : index
    %179 = vector.load %arg10[%c1_74, %c0_75, %c0_76] : memref<2x6x32xf32, #tpu.memory_space<vmem>>, vector<1x6x32xf32>
    %180 = vector.shape_cast %179 : vector<1x6x32xf32> to vector<6x32xf32>
    %181 = vector.extract_strided_slice %180 {offsets = [0, 0], sizes = [1, 32], strides = [1, 1]} : vector<6x32xf32> to vector<1x32xf32>
    %182 = vector.extract_strided_slice %180 {offsets = [1, 0], sizes = [1, 32], strides = [1, 1]} : vector<6x32xf32> to vector<1x32xf32>
    %183 = vector.extract_strided_slice %180 {offsets = [2, 0], sizes = [1, 32], strides = [1, 1]} : vector<6x32xf32> to vector<1x32xf32>
    %184 = vector.extract_strided_slice %180 {offsets = [3, 0], sizes = [1, 32], strides = [1, 1]} : vector<6x32xf32> to vector<1x32xf32>
    %185 = vector.extract_strided_slice %180 {offsets = [4, 0], sizes = [1, 32], strides = [1, 1]} : vector<6x32xf32> to vector<1x32xf32>
    %186 = vector.extract_strided_slice %180 {offsets = [5, 0], sizes = [1, 32], strides = [1, 1]} : vector<6x32xf32> to vector<1x32xf32>
    %187 = arith.truncf %166 : vector<16x32xf32> to vector<16x32xbf16>
    %cst_77 = arith.constant dense<0.000000e+00> : vector<16x96xf32>
    %188 = tpu.matmul %187, %168, %cst_77 {dimension_numbers = #tpu.dot_dimension_numbers<[1], [0], [0], [1], [0, 0, 1, 1], [], []>} : vector<16x32xbf16>, vector<32x96xbf16>, vector<16x96xf32> -> vector<16x96xf32>
    %189 = vector.broadcast %170 : vector<1x96xf32> to vector<16x96xf32>
    %190 = arith.addf %188, %189 : vector<16x96xf32>
    %191 = arith.truncf %190 : vector<16x96xf32> to vector<16x96xbf16>
    %192 = vector.extract_strided_slice %191 {offsets = [0, 0], sizes = [16, 16], strides = [1, 1]} : vector<16x96xbf16> to vector<16x16xbf16>
    %193 = vector.shape_cast %192 : vector<16x16xbf16> to vector<2x8x16xbf16>
    %194 = vector.extract_strided_slice %191 {offsets = [0, 32], sizes = [16, 16], strides = [1, 1]} : vector<16x96xbf16> to vector<16x16xbf16>
    %195 = vector.shape_cast %194 : vector<16x16xbf16> to vector<2x8x16xbf16>
    %196 = vector.extract_strided_slice %191 {offsets = [0, 64], sizes = [16, 16], strides = [1, 1]} : vector<16x96xbf16> to vector<16x16xbf16>
    %197 = vector.shape_cast %196 : vector<16x16xbf16> to vector<2x8x16xbf16>
    "tpu.trace_start"() <{level = 10 : i32, message = "bqd,bkd->bqk"}> : () -> ()
    %cst_78 = arith.constant dense<0.000000e+00> : vector<2x8x8xf32>
    %198 = tpu.matmul %193, %195, %cst_78 {dimension_numbers = #tpu.dot_dimension_numbers<[2], [2], [1], [1], [0, 0, 0, 1, 1, 1], [0], [0]>} : vector<2x8x16xbf16>, vector<2x8x16xbf16>, vector<2x8x8xf32> -> vector<2x8x8xf32>
    "tpu.trace_stop"() : () -> ()
    %199 = arith.addf %198, %28 : vector<2x8x8xf32>
    %cst_79 = arith.constant dense<0xFF800000> : vector<2x8xf32>
    %200 = vector.multi_reduction <maximumf>, %199, %cst_79 [2] : vector<2x8x8xf32> to vector<2x8xf32>
    %201 = vector.shape_cast %200 : vector<2x8xf32> to vector<2x8x1xf32>
    %202 = vector.broadcast %201 : vector<2x8x1xf32> to vector<2x8x8xf32>
    %203 = arith.subf %199, %202 : vector<2x8x8xf32>
    %204 = math.exp %203 : vector<2x8x8xf32>
    %cst_80 = arith.constant dense<0.000000e+00> : vector<2x8xf32>
    %205 = vector.multi_reduction <add>, %204, %cst_80 [2] : vector<2x8x8xf32> to vector<2x8xf32>
    %206 = vector.shape_cast %205 : vector<2x8xf32> to vector<2x8x1xf32>
    %207 = tpu.reciprocal %206 {approx = true} : vector<2x8x1xf32> -> vector<2x8x1xf32>
    %208 = vector.broadcast %207 : vector<2x8x1xf32> to vector<2x8x8xf32>
    %209 = arith.mulf %204, %208 : vector<2x8x8xf32>
    %210 = arith.truncf %209 : vector<2x8x8xf32> to vector<2x8x8xbf16>
    "tpu.trace_start"() <{level = 10 : i32, message = "bqk,bkd->bqd"}> : () -> ()
    %cst_81 = arith.constant dense<0.000000e+00> : vector<2x8x16xf32>
    %211 = tpu.matmul %210, %197, %cst_81 {dimension_numbers = #tpu.dot_dimension_numbers<[2], [1], [1], [2], [0, 0, 0, 1, 1, 2], [0], [0]>} : vector<2x8x8xbf16>, vector<2x8x16xbf16>, vector<2x8x16xf32> -> vector<2x8x16xf32>
    "tpu.trace_stop"() : () -> ()
    %212 = vector.extract_strided_slice %191 {offsets = [0, 16], sizes = [16, 16], strides = [1, 1]} : vector<16x96xbf16> to vector<16x16xbf16>
    %213 = vector.shape_cast %212 : vector<16x16xbf16> to vector<2x8x16xbf16>
    %214 = vector.extract_strided_slice %191 {offsets = [0, 48], sizes = [16, 16], strides = [1, 1]} : vector<16x96xbf16> to vector<16x16xbf16>
    %215 = vector.shape_cast %214 : vector<16x16xbf16> to vector<2x8x16xbf16>
    %216 = vector.extract_strided_slice %191 {offsets = [0, 80], sizes = [16, 16], strides = [1, 1]} : vector<16x96xbf16> to vector<16x16xbf16>
    %217 = vector.shape_cast %216 : vector<16x16xbf16> to vector<2x8x16xbf16>
    "tpu.trace_start"() <{level = 10 : i32, message = "bqd,bkd->bqk"}> : () -> ()
    %cst_82 = arith.constant dense<0.000000e+00> : vector<2x8x8xf32>
    %218 = tpu.matmul %213, %215, %cst_82 {dimension_numbers = #tpu.dot_dimension_numbers<[2], [2], [1], [1], [0, 0, 0, 1, 1, 1], [0], [0]>} : vector<2x8x16xbf16>, vector<2x8x16xbf16>, vector<2x8x8xf32> -> vector<2x8x8xf32>
    "tpu.trace_stop"() : () -> ()
    %219 = arith.addf %218, %28 : vector<2x8x8xf32>
    %cst_83 = arith.constant dense<0xFF800000> : vector<2x8xf32>
    %220 = vector.multi_reduction <maximumf>, %219, %cst_83 [2] : vector<2x8x8xf32> to vector<2x8xf32>
    %221 = vector.shape_cast %220 : vector<2x8xf32> to vector<2x8x1xf32>
    %222 = vector.broadcast %221 : vector<2x8x1xf32> to vector<2x8x8xf32>
    %223 = arith.subf %219, %222 : vector<2x8x8xf32>
    %224 = math.exp %223 : vector<2x8x8xf32>
    %cst_84 = arith.constant dense<0.000000e+00> : vector<2x8xf32>
    %225 = vector.multi_reduction <add>, %224, %cst_84 [2] : vector<2x8x8xf32> to vector<2x8xf32>
    %226 = vector.shape_cast %225 : vector<2x8xf32> to vector<2x8x1xf32>
    %227 = tpu.reciprocal %226 {approx = true} : vector<2x8x1xf32> -> vector<2x8x1xf32>
    %228 = vector.broadcast %227 : vector<2x8x1xf32> to vector<2x8x8xf32>
    %229 = arith.mulf %224, %228 : vector<2x8x8xf32>
    %230 = arith.truncf %229 : vector<2x8x8xf32> to vector<2x8x8xbf16>
    "tpu.trace_start"() <{level = 10 : i32, message = "bqk,bkd->bqd"}> : () -> ()
    %cst_85 = arith.constant dense<0.000000e+00> : vector<2x8x16xf32>
    %231 = tpu.matmul %230, %217, %cst_85 {dimension_numbers = #tpu.dot_dimension_numbers<[2], [1], [1], [2], [0, 0, 0, 1, 1, 2], [0], [0]>} : vector<2x8x8xbf16>, vector<2x8x16xbf16>, vector<2x8x16xf32> -> vector<2x8x16xf32>
    "tpu.trace_stop"() : () -> ()
    %232 = tpu.concatenate %211, %231 in 2 : vector<2x8x16xf32>, vector<2x8x16xf32> -> vector<2x8x32xf32>
    %233 = vector.shape_cast %232 : vector<2x8x32xf32> to vector<16x32xf32>
    %234 = arith.truncf %233 : vector<16x32xf32> to vector<16x32xbf16>
    %cst_86 = arith.constant dense<0.000000e+00> : vector<16x32xf32>
    %235 = tpu.matmul %234, %172, %cst_86 {dimension_numbers = #tpu.dot_dimension_numbers<[1], [0], [0], [1], [0, 0, 1, 1], [], []>} : vector<16x32xbf16>, vector<32x32xbf16>, vector<16x32xf32> -> vector<16x32xf32>
    %236 = vector.broadcast %181 : vector<1x32xf32> to vector<16x32xf32>
    %237 = arith.addf %235, %236 : vector<16x32xf32>
    %238 = arith.addf %166, %237 : vector<16x32xf32>
    %cst_87 = arith.constant dense<0.000000e+00> : vector<16xf32>
    %239 = vector.multi_reduction <add>, %238, %cst_87 [1] : vector<16x32xf32> to vector<16xf32>
    %240 = vector.shape_cast %239 : vector<16xf32> to vector<16x1xf32>
    %cst_88 = arith.constant 3.200000e+01 : f32
    %241 = vector.broadcast %cst_88 : f32 to vector<16x1xf32>
    %242 = arith.divf %240, %241 : vector<16x1xf32>
    %243 = vector.broadcast %242 : vector<16x1xf32> to vector<16x32xf32>
    %244 = arith.subf %238, %243 : vector<16x32xf32>
    %245 = arith.mulf %244, %244 : vector<16x32xf32>
    %cst_89 = arith.constant dense<0.000000e+00> : vector<16xf32>
    %246 = vector.multi_reduction <add>, %245, %cst_89 [1] : vector<16x32xf32> to vector<16xf32>
    %247 = vector.shape_cast %246 : vector<16xf32> to vector<16x1xf32>
    %cst_90 = arith.constant 3.200000e+01 : f32
    %248 = vector.broadcast %cst_90 : f32 to vector<16x1xf32>
    %249 = arith.divf %247, %248 : vector<16x1xf32>
    %250 = vector.broadcast %242 : vector<16x1xf32> to vector<16x32xf32>
    %251 = arith.subf %238, %250 : vector<16x32xf32>
    %cst_91 = arith.constant 9.99999996E-13 : f32
    %252 = vector.broadcast %cst_91 : f32 to vector<16x1xf32>
    %253 = arith.addf %249, %252 : vector<16x1xf32>
    %254 = math.rsqrt %253 : vector<16x1xf32>
    %255 = vector.broadcast %254 : vector<16x1xf32> to vector<16x32xf32>
    %256 = arith.mulf %251, %255 : vector<16x32xf32>
    %257 = vector.broadcast %182 : vector<1x32xf32> to vector<16x32xf32>
    %258 = arith.mulf %256, %257 : vector<16x32xf32>
    %259 = vector.broadcast %183 : vector<1x32xf32> to vector<16x32xf32>
    %260 = arith.addf %258, %259 : vector<16x32xf32>
    %261 = arith.truncf %260 : vector<16x32xf32> to vector<16x32xbf16>
    %cst_92 = arith.constant dense<0.000000e+00> : vector<16x64xf32>
    %262 = tpu.matmul %261, %174, %cst_92 {dimension_numbers = #tpu.dot_dimension_numbers<[1], [0], [0], [1], [0, 0, 1, 1], [], []>} : vector<16x32xbf16>, vector<32x64xbf16>, vector<16x64xf32> -> vector<16x64xf32>
    %263 = vector.broadcast %178 : vector<1x64xf32> to vector<16x64xf32>
    %264 = arith.addf %262, %263 : vector<16x64xf32>
    %cst_93 = arith.constant 5.000000e-01 : f32
    %265 = vector.broadcast %cst_93 : f32 to vector<16x64xf32>
    %266 = arith.mulf %265, %264 : vector<16x64xf32>
    %cst_94 = arith.constant 4.471500e-02 : f32
    %267 = vector.broadcast %cst_94 : f32 to vector<16x64xf32>
    %268 = arith.mulf %267, %264 : vector<16x64xf32>
    %269 = arith.mulf %268, %264 : vector<16x64xf32>
    %270 = arith.mulf %269, %264 : vector<16x64xf32>
    %271 = arith.addf %264, %270 : vector<16x64xf32>
    %cst_95 = arith.constant 0.797884583 : f32
    %272 = vector.broadcast %cst_95 : f32 to vector<16x64xf32>
    %273 = arith.mulf %272, %271 : vector<16x64xf32>
    %274 = math.tanh %273 : vector<16x64xf32>
    %cst_96 = arith.constant 1.000000e+00 : f32
    %275 = vector.broadcast %cst_96 : f32 to vector<16x64xf32>
    %276 = arith.addf %275, %274 : vector<16x64xf32>
    %277 = arith.mulf %266, %276 : vector<16x64xf32>
    %278 = arith.truncf %277 : vector<16x64xf32> to vector<16x64xbf16>
    %cst_97 = arith.constant dense<0.000000e+00> : vector<16x32xf32>
    %279 = tpu.matmul %278, %176, %cst_97 {dimension_numbers = #tpu.dot_dimension_numbers<[1], [0], [0], [1], [0, 0, 1, 1], [], []>} : vector<16x64xbf16>, vector<64x32xbf16>, vector<16x32xf32> -> vector<16x32xf32>
    %280 = vector.broadcast %184 : vector<1x32xf32> to vector<16x32xf32>
    %281 = arith.addf %279, %280 : vector<16x32xf32>
    %282 = arith.addf %260, %281 : vector<16x32xf32>
    %cst_98 = arith.constant dense<0.000000e+00> : vector<16xf32>
    %283 = vector.multi_reduction <add>, %282, %cst_98 [1] : vector<16x32xf32> to vector<16xf32>
    %284 = vector.shape_cast %283 : vector<16xf32> to vector<16x1xf32>
    %cst_99 = arith.constant 3.200000e+01 : f32
    %285 = vector.broadcast %cst_99 : f32 to vector<16x1xf32>
    %286 = arith.divf %284, %285 : vector<16x1xf32>
    %287 = vector.broadcast %286 : vector<16x1xf32> to vector<16x32xf32>
    %288 = arith.subf %282, %287 : vector<16x32xf32>
    %289 = arith.mulf %288, %288 : vector<16x32xf32>
    %cst_100 = arith.constant dense<0.000000e+00> : vector<16xf32>
    %290 = vector.multi_reduction <add>, %289, %cst_100 [1] : vector<16x32xf32> to vector<16xf32>
    %291 = vector.shape_cast %290 : vector<16xf32> to vector<16x1xf32>
    %cst_101 = arith.constant 3.200000e+01 : f32
    %292 = vector.broadcast %cst_101 : f32 to vector<16x1xf32>
    %293 = arith.divf %291, %292 : vector<16x1xf32>
    %294 = vector.broadcast %286 : vector<16x1xf32> to vector<16x32xf32>
    %295 = arith.subf %282, %294 : vector<16x32xf32>
    %cst_102 = arith.constant 9.99999996E-13 : f32
    %296 = vector.broadcast %cst_102 : f32 to vector<16x1xf32>
    %297 = arith.addf %293, %296 : vector<16x1xf32>
    %298 = math.rsqrt %297 : vector<16x1xf32>
    %299 = vector.broadcast %298 : vector<16x1xf32> to vector<16x32xf32>
    %300 = arith.mulf %295, %299 : vector<16x32xf32>
    %301 = vector.broadcast %185 : vector<1x32xf32> to vector<16x32xf32>
    %302 = arith.mulf %300, %301 : vector<16x32xf32>
    %303 = vector.broadcast %186 : vector<1x32xf32> to vector<16x32xf32>
    %304 = arith.addf %302, %303 : vector<16x32xf32>
    %305 = vector.shape_cast %304 : vector<16x32xf32> to vector<2x8x32xf32>
    %306 = vector.extract_strided_slice %305 {offsets = [0, 0, 0], sizes = [2, 1, 32], strides = [1, 1, 1]} : vector<2x8x32xf32> to vector<2x1x32xf32>
    %307 = vector.shape_cast %306 : vector<2x1x32xf32> to vector<2x32xf32>
    %cst_103 = arith.constant 0.000000e+00 : f32
    %308 = vector.broadcast %cst_103 : f32 to vector<6x32xf32>
    %309 = tpu.concatenate %307, %308 in 0 : vector<2x32xf32>, vector<6x32xf32> -> vector<8x32xf32>
    %c0_104 = arith.constant 0 : index
    %c0_105 = arith.constant 0 : index
    %310 = vector.load %arg11[%c0_104, %c0_105] : memref<32x128xf32, #tpu.memory_space<vmem>>, vector<32x128xf32>
    %cst_106 = arith.constant dense<0.000000e+00> : vector<8x128xf32>
    %311 = tpu.matmul %309, %310, %cst_106 {dimension_numbers = #tpu.dot_dimension_numbers<[1], [0], [0], [1], [0, 0, 1, 1], [], []>} : vector<8x32xf32>, vector<32x128xf32>, vector<8x128xf32> -> vector<8x128xf32>
    %c0_107 = arith.constant 0 : index
    %c0_108 = arith.constant 0 : index
    %312 = vector.load %arg12[%c0_107, %c0_108] : memref<1x128xf32, #tpu.memory_space<vmem>>, vector<1x128xf32>
    %313 = vector.broadcast %312 : vector<1x128xf32> to vector<8x128xf32>
    %314 = arith.addf %311, %313 : vector<8x128xf32>
    %c0_109 = arith.constant 0 : index
    %c0_110 = arith.constant 0 : index
    %315 = vector.load %arg13[%c0_109, %c0_110] : memref<8x128xf32, #tpu.memory_space<vmem>>, vector<8x128xf32>
    tpu.vector_store %arg13[%c0_109, %c0_110], %314 {strides = array<i32>} : memref<8x128xf32, #tpu.memory_space<vmem>>, vector<8x128xf32>,
    return
  }
  func.func @transform_0(%arg0: i32) -> (i32, i32) {
    %c0_i32 = arith.constant 0 : i32
    %c0_i32_0 = arith.constant 0 : i32
    %c0_i32_1 = arith.constant 0 : i32
    return %c0_i32, %c0_i32_0 : i32, i32
  }
  func.func @transform_1(%arg0: i32) -> (i32, i32, i32) {
    %c0_i32 = arith.constant 0 : i32
    %c0_i32_0 = arith.constant 0 : i32
    %c0_i32_1 = arith.constant 0 : i32
    %c0_i32_2 = arith.constant 0 : i32
    return %c0_i32, %c0_i32_0, %c0_i32_1 : i32, i32, i32
  }
  func.func @transform_2(%arg0: i32) -> (i32, i32) {
    %c0_i32 = arith.constant 0 : i32
    %c0_i32_0 = arith.constant 0 : i32
    %c0_i32_1 = arith.constant 0 : i32
    return %c0_i32, %c0_i32_0 : i32, i32
  }
  func.func @transform_3(%arg0: i32) -> (i32, i32, i32) {
    %c0_i32 = arith.constant 0 : i32
    %c0_i32_0 = arith.constant 0 : i32
    %c0_i32_1 = arith.constant 0 : i32
    %c0_i32_2 = arith.constant 0 : i32
    return %c0_i32, %c0_i32_0, %c0_i32_1 : i32, i32, i32
  }
  func.func @transform_4(%arg0: i32) -> (i32, i32, i32) {
    %c0_i32 = arith.constant 0 : i32
    %c0_i32_0 = arith.constant 0 : i32
    %c0_i32_1 = arith.constant 0 : i32
    %c0_i32_2 = arith.constant 0 : i32
    return %c0_i32, %c0_i32_0, %c0_i32_1 : i32, i32, i32
  }
  func.func @transform_5(%arg0: i32) -> (i32, i32, i32) {
    %c0_i32 = arith.constant 0 : i32
    %c0_i32_0 = arith.constant 0 : i32
    %c0_i32_1 = arith.constant 0 : i32
    %c0_i32_2 = arith.constant 0 : i32
    return %c0_i32, %c0_i32_0, %c0_i32_1 : i32, i32, i32
  }
  func.func @transform_6(%arg0: i32) -> (i32, i32, i32) {
    %c0_i32 = arith.constant 0 : i32
    %c0_i32_0 = arith.constant 0 : i32
    %c0_i32_1 = arith.constant 0 : i32
    %c0_i32_2 = arith.constant 0 : i32
    return %c0_i32, %c0_i32_0, %c0_i32_1 : i32, i32, i32
  }
  func.func @transform_7(%arg0: i32) -> (i32, i32, i32) {
    %c0_i32 = arith.constant 0 : i32
    %c0_i32_0 = arith.constant 0 : i32
    %c0_i32_1 = arith.constant 0 : i32
    %c0_i32_2 = arith.constant 0 : i32
    return %c0_i32, %c0_i32_0, %c0_i32_1 : i32, i32, i32
  }
  func.func @transform_8(%arg0: i32) -> (i32, i32, i32) {
    %c0_i32 = arith.constant 0 : i32
    %c0_i32_0 = arith.constant 0 : i32
    %c0_i32_1 = arith.constant 0 : i32
    %c0_i32_2 = arith.constant 0 : i32
    return %c0_i32, %c0_i32_0, %c0_i32_1 : i32, i32, i32
  }
  func.func @transform_9(%arg0: i32) -> (i32, i32, i32) {
    %c0_i32 = arith.constant 0 : i32
    %c0_i32_0 = arith.constant 0 : i32
    %c0_i32_1 = arith.constant 0 : i32
    %c0_i32_2 = arith.constant 0 : i32
    return %c0_i32, %c0_i32_0, %c0_i32_1 : i32, i32, i32
  }
  func.func @transform_10(%arg0: i32) -> (i32, i32) {
    %c0_i32 = arith.constant 0 : i32
    %c0_i32_0 = arith.constant 0 : i32
    %c0_i32_1 = arith.constant 0 : i32
    return %c0_i32, %c0_i32_0 : i32, i32
  }
  func.func @transform_11(%arg0: i32) -> (i32, i32) {
    %c0_i32 = arith.constant 0 : i32
    %c0_i32_0 = arith.constant 0 : i32
    %c0_i32_1 = arith.constant 0 : i32
    return %c0_i32, %c0_i32_0 : i32, i32
  }
  func.func @transform_12(%arg0: i32) -> (i32, i32) {
    %c0_i32 = arith.constant 0 : i32
    %c0_i32_0 = arith.constant 0 : i32
    %c0_i32_1 = arith.constant 0 : i32
    return %c0_i32, %c0_i32_0 : i32, i32
  }
}

</mosaic_0001>

<bundles_post_ra>
// kernel: evidence_classifier.1
= control target key start
LH: loop header
LB: loop body
LE: loop exit
PB: predicated region body
PF: predicated region fallthrough
CT: control target
= control target key end

     0   :  { %vm45_vm0 = vcmask 261120   ;;  %v2305_v15 = vmov 0.0   ;;  %vm2306_vm1 = vmmov 0   ;;  %v73_v21 = vlaneseq  ;;  %s2307_s13 = smov 96   ;;  %s2309_s18 = smov 80   ;;  %s2801_s0 = inlined_call_operand.vmem [shape: f32[16,32], index: 0, kind: input, shape index: {}]   ;;  %s2802_s3 = inlined_call_operand.vmem [shape: bf16[2,32,96], index: 3, kind: input, shape index: {}]   ;;  %s2803_s2 = inlined_call_operand.vmem [shape: f32[2,32], index: 2, kind: input, shape index: {}]   ;;  %s2804_s4 = inlined_call_operand.vmem [shape: f32[2,1,96], index: 4, kind: input, shape index: {}]   ;;  %s2805_s1 = inlined_call_operand.vmem [shape: f32[2,1,8], index: 1, kind: input, shape index: {}]   ;;  %s2806_s5 = inlined_call_operand.vmem [shape: bf16[2,32,32], index: 5, kind: input, shape index: {}]   ;;  %s2807_s9 = inlined_call_operand.vmem [shape: f32[2,6,32], index: 9, kind: input, shape index: {}]   ;;  %s2808_s6 = inlined_call_operand.vmem [shape: bf16[2,32,64], index: 6, kind: input, shape index: {}]   ;;  %s2809_s7 = inlined_call_operand.vmem [shape: bf16[2,64,32], index: 7, kind: input, shape index: {}]   ;;  %s2810_s8 = inlined_call_operand.vmem [shape: f32[2,1,64], index: 8, kind: input, shape index: {}]   ;;  %s2811_s10 = inlined_call_operand.vmem [shape: f32[32,128], index: 10, kind: input, shape index: {}]   ;;  %s2812_s11 = inlined_call_operand.vmem [shape: f32[1,128], index: 11, kind: input, shape index: {}]   ;;  %s2813_s12 = inlined_call_operand.vmem [shape: f32[8,128], index: 12, kind: output, shape index: {}]  }
   0x1   :  { %v42_v0 = vld [vmem:[%s2801_s0] sm:$0xff]  ;;  %v43_v1 = vld [vmem:[%s2801_s0 + $0x8] sm:$0xff]  ;;  %2021 = vmatprep.subr.bf16.mxu1 %v2305_v15  ;;  %2035 = vmatprep.subr.bf16.mxu0 %v2305_v15  ;;  %vm193_vm2 = vcmask 130048   ;;  %vm288_vm3 = vcmask 64512   ;;  %vm318_vm4 = vcmask 1043456   ;;  %s2310_s19 = smov 112  }
   0x2   :  { %v46_v2 = vsel %vm45_vm0, %v42_v0, 0.0  ;;  %v49_v3 = vsel %vm45_vm0, %v43_v1, 0.0  ;;  %v2225_v14 = vld [vmem:[%s2802_s3] sm:$0xff]   ;;  %v2226_v16 = vld [vmem:[%s2802_s3 + $0x8] sm:$0xff]   ;;  %2025 = vmatprep.mubr.msk.bf16.mxu1 %vm2306_vm1, %v2305_v15  ;;  %2037 = vmatprep.mubr.msk.bf16.mxu0 %vm2306_vm1, %v2305_v15  ;;  %v2403_v24 = vshrl.u32 %v73_v21, 7  ;;  %s2311_s20 = smov 48  }
   0x3   :  { %47 = vadd.xlane.f32.xlu0 %v46_v2  ;;  %2022 = vmatpush3.bf16.msra.mxu1 %v2225_v14  ;;  %v44_v26 = vld [vmem:[%s2803_s2] sm:$0x3]  ;;  %s2312_s0 = smov 16   ;;  %vm851_vm5 = vcmask 523264   ;;  %vm1779_vm6 = vcmask 1041409   ;;  %vm1782_vm7 = vcmask 1041408  }
   0x4   :  { %2023 = vmatprep.subr.bf16.mxu1 %v2305_v15  ;;  %v2406_v25 = vsub.s32 0, %v2403_v24  ;;  %v2413_v30 = vsub.s32 1, %v2403_v24  ;;  %v1875_v39 = vld [vmem:[%s2804_s4] ss:$0 sm:$0xff]  ;;  %v2456_v54 = vld [vmem:[%s2805_s1 + $0x1] ss:$0 sm:$0xff] }
   0x5   :  { %v2451_v52 = vld [vmem:[%s2805_s1] ss:$0 sm:$0xff]  ;;  %s2308_s1 = smov 64  }
   0x6   :  { %v76_v29 = vrot.slane %v44_v26, %v2406_v25  ;;  %v82_v34 = vrot.slane %v44_v26, %v2413_v30 }
   0x7   :  { %50 = vadd.xlane.f32.xlu0 %v49_v3  ;;  %2024 = vmatpush3.bf16.msra.mxu1 %v2226_v16 }
   0x8   :  { %2029 = vmatprep.subr.bf16.mxu1 %v2305_v15 }
  0x90   :  { %v48_v4 = vpop.xlane.xlu0 %47 }
  0x91   :  { %v53_v5 = vmul.f32 0.03125, %v48_v4 }
  0x93   :  { %v55_v6 = vsub.f32 %v42_v0, %v53_v5 }
  0x94   :  { %v51_v7 = vpop.xlane.xlu0 %50 }
  0x95   :  { %v54_v8 = vmul.f32 0.03125, %v51_v7  ;;  %v57_v9 = vmul.f32 %v55_v6, %v55_v6 }
  0x97   :  { %v56_v10 = vsub.f32 %v43_v1, %v54_v8  ;;  %v59_v11 = vsel %vm45_vm0, %v57_v9, 0.0 }
  0x98   :  { %60 = vadd.xlane.f32.xlu1 %v59_v11 }
  0x99   :  { %v58_v12 = vmul.f32 %v56_v10, %v56_v10 }
  0x9b   :  { %v62_v13 = vsel %vm45_vm0, %v58_v12, 0.0 }
  0x9c   :  { %63 = vadd.xlane.f32.xlu1 %v62_v13 }
 0x125   :  { %v61_v17 = vpop.xlane.xlu1 %60 }
 0x126   :  { %v65_v18 = vmul.f32 0.03125, %v61_v17 }
 0x128   :  { %v67_v19 = vadd.f32 1e-12, %v65_v18 }
 0x129   :  { %v64_v20 = vpop.xlane.xlu1 %63 }
 0x12a   :  { %2245 = vrsqrt.f32 %v67_v19  ;;  %v66_v22 = vmul.f32 0.03125, %v64_v20 }
 0x12c   :  { %v68_v23 = vadd.f32 1e-12, %v66_v22 }
 0x12e   :  { %2247 = vrsqrt.f32 %v68_v23 }
 0x134   :  { %v2246_v27 = vpop.eup %2245 }
 0x135   :  { %v71_v28 = vmul.f32 %v2246_v27, %v55_v6 }
 0x137   :  { %v77_v33 = vmul.f32 %v76_v29, %v71_v28 }
 0x138   :  { %v2248_v31 = vpop.eup %2247 }
 0x139   :  { %v72_v32 = vmul.f32 %v2248_v31, %v56_v10  ;;  %v2416_v36 = vadd.f32 %v82_v34, %v77_v33 }
 0x13b   :  { %v78_v35 = vmul.f32 %v76_v29, %v72_v32 }
 0x13d   :  { %v2418_v37 = vadd.f32 %v82_v34, %v78_v35 }
 0x13f   :  { %v122_v38 = vpack.c.bf16 %v2418_v37, %v2416_v36 }
 0x141   :  { %2026 = vmatmul.mubr.msk.bf16.vlgmr.msra.gmra.mrb[0].mxu1 %vm45_vm0, %v122_v38 }
 0x142   :  { %2031 = vmatprep.mubr.msk.bf16.mxu1 %vm2306_vm1, %v2305_v15 }
 0x214   :  { %v178_v40 = vpop.f32.mrb[0].mxu1 }
 0x215   :  { %v179_v41 = vadd.f32 %v1875_v39, %v178_v40  ;;  %v2027_v42 = vpop.f32.mrb[1].mxu1 }
 0x216   :  { %v181_v43 = vpop.f32.mrb[2].mxu1 }
 0x217   :  { %v2428_v44 = vpack.c.bf16 %v179_v41, %v179_v41  ;;  %v182_v45 = vadd.f32 %v1875_v39, %v181_v43  ;;  %v2028_v46 = vpop.f32.mrb[3].mxu1 }
 0x219   :  { %v2430_v47 = vpack.c.bf16 %v182_v45, %v182_v45  ;;  %191 = vrot.lane.b32.xlu0 %v2428_v44, %s2307_s13 }
 0x21b   :  { %240 = vrot.lane.b32.xlu1 %v2430_v47, %s2307_s13 }
 0x28b   :  { %v192_v48 = vpop.permute.xlu0 %191 }
 0x28c   :  { %v198_v49 = vsel %vm193_vm2, %v192_v48, 0 }
 0x28d   :  { %2030 = vmatpush3.bf16.xpose.msra.mxu1 %v198_v49  ;;  %v241_v50 = vpop.permute.xlu1 %240 }
 0x28e   :  { %v246_v51 = vsel %vm193_vm2, %v241_v50, 0  ;;  %2041 = vmatprep.subr.bf16.mxu1 %v2305_v15 }
 0x28f   :  { %2036 = vmatpush3.bf16.xpose.msra.mxu0 %v246_v51 }
 0x290   :  { %2047 = vmatprep.subr.bf16.mxu0 %v2305_v15 }
 0x294   :  { %2032 = vmatmul.mubr.msk.bf16.vlgmr.msra.gmra.mrb[4].mxu1 %vm193_vm2, %v2428_v44 }
 0x295   :  { %2043 = vmatprep.mubr.msk.bf16.mxu1 %vm2306_vm1, %v2305_v15 }
 0x296   :  { %2038 = vmatmul.mubr.msk.bf16.vlgmr.msra.gmra.mrb[0].mxu0 %vm193_vm2, %v2430_v47 }
 0x297   :  { %2049 = vmatprep.mubr.msk.bf16.mxu0 %vm2306_vm1, %v2305_v15 }
 0x367   :  { %v234_v53 = vpop.f32.mrb[4].mxu1 }
 0x368   :  { %v235_v55 = vadd.f32 %v2451_v52, %v234_v53  ;;  %v2033_v56 = vpop.f32.mrb[5].mxu1 }
 0x369   :  { %v237_v57 = vpop.f32.mrb[6].mxu1  ;;  %v282_v58 = vpop.f32.mrb[0].mxu0 }
 0x36a   :  { %v283_v59 = vadd.f32 %v2456_v54, %v282_v58  ;;  %v2034_v60 = vpop.f32.mrb[7].mxu1  ;;  %v2039_v61 = vpop.f32.mrb[1].mxu0  ;;  %v289_v62 = vsel %vm288_vm3, %v235_v55, -inf }
 0x36b   :  { %v285_v63 = vpop.f32.mrb[2].mxu0  ;;  %290 = vmax.xlane.f32.xlu1 %v289_v62 }
 0x36c   :  { %v2040_v0 = vpop.f32.mrb[3].mxu0  ;;  %v292_v1 = vsel %vm288_vm3, %v283_v59, -inf }
 0x36d   :  { %293 = vmax.xlane.f32.xlu0 %v292_v1 }
 0x37c   :  { %362 = vrot.lane.b32.xlu1 %v2430_v47, %s2308_s1 }
 0x380   :  { %412 = vrot.lane.b32.xlu1 %v2428_v44, %s2309_s18 }
 0x3f8   :  { %v291_v2 = vpop.xlane.xlu1 %290 }
 0x3f9   :  { %v295_v3 = vsub.f32 %v235_v55, %v291_v2 }
 0x3fa   :  { %v294_v4 = vpop.xlane.xlu0 %293 }
 0x3fb   :  { %v297_v5 = vmul.f32 1.442695, %v295_v3  ;;  %v296_v6 = vsub.f32 %v283_v59, %v294_v4 }
 0x3fc   :  { %v363_v7 = vpop.permute.xlu1 %362 }
 0x3fd   :  { %2249 = vpow2.f32 %v297_v5  ;;  %v299_v8 = vmul.f32 1.442695, %v296_v6  ;;  %v368_v9 = vsel %vm318_vm4, %v363_v7, 0 }
 0x3fe   :  { %2048 = vmatpush3.bf16.msra.mxu0 %v368_v9 }
 0x3ff   :  { %2251 = vpow2.f32 %v299_v8  ;;  %2059 = vmatprep.subr.bf16.mxu0 %v2305_v15 }
 0x400   :  { %v413_v14 = vpop.permute.xlu1 %412 }
 0x401   :  { %v418_v28 = vsel %vm193_vm2, %v413_v14, 0 }
 0x407   :  { %v2250_v10 = vpop.eup %2249 }
 0x408   :  { %v301_v11 = vsel %vm288_vm3, %v2250_v10, 0.0 }
 0x409   :  { %v2252_v12 = vpop.eup %2251  ;;  %302 = vadd.xlane.f32.xlu0 %v301_v11 }
 0x40a   :  { %v304_v13 = vsel %vm288_vm3, %v2252_v12, 0.0 }
 0x40b   :  { %305 = vadd.xlane.f32.xlu1 %v304_v13 }
 0x41c   :  { %462 = vrot.lane.b32.xlu1 %v2430_v47, %s2309_s18 }
 0x41f   :  { %313 = vrot.lane.b32.xlu0 %v2428_v44, %s2308_s1 }
 0x420   :  { %460 = vrot.lane.b32.xlu1 %v2430_v47, %s2310_s19 }
 0x423   :  { %410 = vrot.lane.b32.xlu0 %v2428_v44, %s2310_s19 }
 0x496   :  { %v303_v16 = vpop.xlane.xlu0 %302 }
 0x497   :  { %2253 = vrcp.f32 %v303_v16 }
 0x498   :  { %v306_v17 = vpop.xlane.xlu1 %305 }
 0x499   :  { %2255 = vrcp.f32 %v306_v17  ;;  %v2227_v17 = vld [vmem:[%s2806_s5] sm:$0xff]  }
 0x49a   :  { %v314_v18 = vpop.permute.xlu0 %313 }
 0x49b   :  { %v320_v19 = vsel %vm318_vm4, %v314_v18, 0  ;;  %v2228_v18 = vld [vmem:[%s2806_s5 + $0x8] sm:$0xff]  }
 0x49c   :  { %2042 = vmatpush3.bf16.msra.mxu1 %v320_v19  ;;  %v463_v27 = vpop.permute.xlu1 %462 }
 0x49d   :  { %2053 = vmatprep.subr.bf16.mxu1 %v2305_v15  ;;  %v468_v31 = vsel %vm193_vm2, %v463_v27, 0 }
 0x49e   :  { %v411_v32 = vpop.permute.xlu0 %410 }
 0x4a0   :  { %v461_v33 = vpop.permute.xlu1 %460 }
 0x4a1   :  { %v2254_v20 = vpop.eup %2253 }
 0x4a2   :  { %v309_v21 = vmul.f32 %v2254_v20, %v2250_v10 }
 0x4a3   :  { %v2256_v22 = vpop.eup %2255 }
 0x4a4   :  { %v310_v23 = vmul.f32 %v2256_v22, %v2252_v12  ;;  %v311_v26 = vpack.c.bf16 %v309_v21, %v309_v21 }
 0x4a6   :  { %2044 = vmatmul.mubr.msk.bf16.vlgmr.msra.gmra.mrb[8].mxu1 %vm288_vm3, %v311_v26  ;;  %v312_v29 = vpack.c.bf16 %v310_v23, %v310_v23 }
 0x4a7   :  { %2054 = vmatpush3.bf16.xpose.msra.mxu1 %v418_v28  ;;  %2055 = vmatprep.mubr.msk.bf16.mxu1 %vm2306_vm1, %v2305_v15 }
 0x4a8   :  { %2050 = vmatmul.mubr.msk.bf16.vlgmr.msra.gmra.mrb[4].mxu0 %vm288_vm3, %v312_v29  ;;  %2065 = vmatprep.subr.bf16.mxu1 %v2305_v15 }
 0x4a9   :  { %2060 = vmatpush3.bf16.xpose.msra.mxu0 %v468_v31  ;;  %2061 = vmatprep.mubr.msk.bf16.mxu0 %vm2306_vm1, %v2305_v15 }
 0x4aa   :  { %2071 = vmatprep.subr.bf16.mxu0 %v2305_v15 }
 0x4ae   :  { %2056 = vmatmul.mubr.msk.bf16.vlgmr.msra.gmra.mrb[12].mxu1 %vm193_vm2, %v411_v32 }
 0x4af   :  { %2067 = vmatprep.mubr.msk.bf16.mxu1 %vm2306_vm1, %v2305_v15 }
 0x4b0   :  { %2062 = vmatmul.mubr.msk.bf16.vlgmr.msra.gmra.mrb[8].mxu0 %vm193_vm2, %v461_v33 }
 0x4b1   :  { %2073 = vmatprep.mubr.msk.bf16.mxu0 %vm2306_vm1, %v2305_v15 }
 0x579   :  { %v2496_v34 = vpop.f32.mrb[8].mxu1 }
 0x57a   :  { %v2045_v35 = vpop.f32.mrb[9].mxu1 }
 0x57b   :  { %v359_v38 = vpop.f32.mrb[10].mxu1  ;;  %v2498_v39 = vpop.f32.mrb[4].mxu0 }
 0x57c   :  { %v2046_v40 = vpop.f32.mrb[11].mxu1  ;;  %v2051_v41 = vpop.f32.mrb[5].mxu0 }
 0x57d   :  { %v407_v42 = vpop.f32.mrb[6].mxu0  ;;  %v2539_v41 = vld [vmem:[%s2807_s9] sm:$0x3f] }
 0x57e   :  { %v2052_v43 = vpop.f32.mrb[7].mxu0  ;;  %v644_v42 = vrot.slane %v2539_v41, %v2406_v25 }
 0x581   :  { %v454_v45 = vpop.f32.mrb[12].mxu1 }
 0x582   :  { %v455_v46 = vadd.f32 %v2451_v52, %v454_v45  ;;  %v2057_v48 = vpop.f32.mrb[13].mxu1 }
 0x583   :  { %v457_v49 = vpop.f32.mrb[14].mxu1  ;;  %v504_v50 = vpop.f32.mrb[8].mxu0 }
 0x584   :  { %v505_v51 = vadd.f32 %v2456_v54, %v504_v50  ;;  %v2058_v53 = vpop.f32.mrb[15].mxu1  ;;  %v2063_v55 = vpop.f32.mrb[9].mxu0  ;;  %v510_v56 = vsel %vm288_vm3, %v455_v46, -inf }
 0x585   :  { %v507_v57 = vpop.f32.mrb[10].mxu0  ;;  %511 = vmax.xlane.f32.xlu0 %v510_v56 }
 0x586   :  { %v2064_v58 = vpop.f32.mrb[11].mxu0  ;;  %v513_v59 = vsel %vm288_vm3, %v505_v51, -inf }
 0x587   :  { %514 = vmax.xlane.f32.xlu1 %v513_v59 }
 0x598   :  { %582 = vrot.lane.b32.xlu1 %v2430_v47, %s2311_s20 }
 0x612   :  { %v512_v60 = vpop.xlane.xlu0 %511 }
 0x613   :  { %v516_v61 = vsub.f32 %v455_v46, %v512_v60 }
 0x614   :  { %v515_v62 = vpop.xlane.xlu1 %514 }
 0x615   :  { %v518_v63 = vmul.f32 1.442695, %v516_v61  ;;  %v517_v0 = vsub.f32 %v505_v51, %v515_v62 }
 0x617   :  { %2257 = vpow2.f32 %v518_v63  ;;  %v520_v1 = vmul.f32 1.442695, %v517_v0  ;;  %v2230_v0 = vld [vmem:[%s2808_s6 + $0x8] sm:$0xff]  }
 0x618   :  { %v583_v2 = vpop.permute.xlu1 %582 }
 0x619   :  { %2259 = vpow2.f32 %v520_v1  ;;  %v588_v3 = vsel %vm318_vm4, %v583_v2, 0 }
 0x61a   :  { %2072 = vmatpush3.bf16.msra.mxu0 %v588_v3 }
 0x61b   :  { %2085 = vmatprep.subr.bf16.mxu0 %v2305_v15 }
 0x621   :  { %v2258_v4 = vpop.eup %2257 }
 0x622   :  { %v522_v5 = vsel %vm288_vm3, %v2258_v4, 0.0 }
 0x623   :  { %v2260_v6 = vpop.eup %2259  ;;  %523 = vadd.xlane.f32.xlu0 %v522_v5 }
 0x624   :  { %v525_v47 = vsel %vm288_vm3, %v2260_v6, 0.0 }
 0x627   :  { %526 = vadd.xlane.f32.xlu0 %v525_v47 }
 0x63d   :  { %534 = vrot.lane.b32.xlu0 %v2428_v44, %s2311_s20 }
 0x6b0   :  { %v524_v7 = vpop.xlane.xlu0 %523 }
 0x6b1   :  { %2261 = vrcp.f32 %v524_v7  ;;  %v732_v7 = vrot.slane %v2539_v41, %v2413_v30 }
 0x6b4   :  { %v527_v8 = vpop.xlane.xlu0 %526 }
 0x6b5   :  { %2263 = vrcp.f32 %v527_v8 }
 0x6b8   :  { %v535_v9 = vpop.permute.xlu0 %534 }
 0x6b9   :  { %v540_v10 = vsel %vm318_vm4, %v535_v9, 0  ;;  %v737_v9 = vsub.s32 2, %v2403_v24 }
 0x6ba   :  { %2066 = vmatpush3.bf16.msra.mxu1 %v540_v10 }
 0x6bb   :  { %v2262_v11 = vpop.eup %2261  ;;  %2077 = vmatprep.subr.bf16.mxu1 %v2305_v15 }
 0x6bc   :  { %v530_v12 = vmul.f32 %v2262_v11, %v2258_v4 }
 0x6be   :  { %v532_v13 = vpack.c.bf16 %v530_v12, %v530_v12 }
 0x6bf   :  { %v2264_v14 = vpop.eup %2263 }
 0x6c0   :  { %v531_v16 = vmul.f32 %v2264_v14, %v2260_v6  ;;  %2068 = vmatmul.mubr.msk.bf16.vlgmr.msra.gmra.mrb[16].mxu1 %vm288_vm3, %v532_v13  ;;  %v738_v13 = vrot.slane %v2539_v41, %v737_v9 }
 0x6c1   :  { %2081 = vmatprep.mubr.msk.bf16.mxu1 %vm2306_vm1, %v2305_v15  ;;  %2078 = vmatpush3.bf16.msra.mxu1 %v2227_v17 }
 0x6c2   :  { %v533_v44 = vpack.c.bf16 %v531_v16, %v531_v16  ;;  %2079 = vmatprep.subr.bf16.mxu1 %v2305_v15 }
 0x6c4   :  { %2074 = vmatmul.mubr.msk.bf16.vlgmr.msra.gmra.mrb[12].mxu0 %vm288_vm3, %v533_v44 }
 0x6c5   :  { %2089 = vmatprep.mubr.msk.bf16.mxu0 %vm2306_vm1, %v2305_v15  ;;  %2080 = vmatpush3.bf16.msra.mxu1 %v2228_v18  ;;  %v2231_v18 = vld [vmem:[%s2809_s7] sm:$0xff]  }
 0x6c6   :  { %2093 = vmatprep.subr.bf16.mxu1 %v2305_v15 }
 0x793   :  { %v576_v19 = vpop.f32.mrb[16].mxu1 }
 0x794   :  { %v2069_v20 = vpop.f32.mrb[17].mxu1 }
 0x795   :  { %v579_v21 = vpop.f32.mrb[18].mxu1  ;;  %v2233_v20 = vld [vmem:[%s2809_s7 + $0x10] sm:$0xff]  }
 0x796   :  { %v2070_v22 = vpop.f32.mrb[19].mxu1  ;;  %v2234_v21 = vld [vmem:[%s2809_s7 + $0x18] sm:$0xff]  }
 0x797   :  { %v624_v23 = vpop.f32.mrb[12].mxu0  ;;  %v1892_v22 = vld [vmem:[%s2810_s8] ss:$0 sm:$0xff] }
 0x798   :  { %v2215_v26 = vpack.i.bf16 %v624_v23, %v576_v19  ;;  %v2075_v27 = vpop.f32.mrb[13].mxu0  ;;  %v2232_v19 = vld [vmem:[%s2809_s7 + $0x8] sm:$0xff]  }
 0x799   :  { %v627_v28 = vpop.f32.mrb[14].mxu0 }
 0x79a   :  { %v2076_v29 = vpop.f32.mrb[15].mxu0  ;;  %2216 = vrot.lane.b32.xlu1 %v2215_v26, %s2312_s0 }
 0x80c   :  { %v2217_v31 = vpop.permute.xlu1 %2216 }
 0x80d   :  { %v2219_v32 = vunpack.i.h.bf16 %v2217_v31  ;;  %v2218_v33 = vunpack.i.l.bf16 %v2217_v31 }
 0x80f   :  { %v639_v35 = vsel %vm193_vm2, %v2498_v39, %v2219_v32  ;;  %v638_v38 = vsel %vm193_vm2, %v2496_v34, %v2218_v33 }
 0x810   :  { %v640_v40 = vpack.c.bf16 %v639_v35, %v638_v38 }
 0x812   :  { %2082 = vmatmul.mubr.msk.bf16.vlgmr.msra.gmra.mrb[20].mxu1 %vm45_vm0, %v640_v40 }
 0x813   :  { %2101 = vmatprep.mubr.msk.bf16.mxu1 %vm2306_vm1, %v2305_v15  ;;  %2094 = vmatpush3.bf16.msra.mxu1 %v2231_v18 }
 0x814   :  { %2095 = vmatprep.subr.bf16.mxu1 %v2305_v15 }
 0x817   :  { %2096 = vmatpush3.bf16.msra.mxu1 %v2232_v19 }
 0x818   :  { %2097 = vmatprep.subr.bf16.mxu1 %v2305_v15 }
 0x81b   :  { %2098 = vmatpush3.bf16.msra.mxu1 %v2233_v20 }
 0x81c   :  { %2099 = vmatprep.subr.bf16.mxu1 %v2305_v15 }
 0x81f   :  { %2100 = vmatpush3.bf16.msra.mxu1 %v2234_v21 }
 0x820   :  { %2119 = vmatprep.subr.bf16.mxu1 %v2305_v15 }
 0x8e5   :  { %v694_v43 = vpop.f32.mrb[20].mxu1 }
 0x8e6   :  { %v695_v45 = vadd.f32 %v694_v43, %v644_v42  ;;  %v2083_v39 = vpop.f32.mrb[21].mxu1 }
 0x8e7   :  { %v697_v46 = vpop.f32.mrb[22].mxu1 }
 0x8e8   :  { %v698_v48 = vadd.f32 %v697_v46, %v644_v42  ;;  %v2084_v34 = vpop.f32.mrb[23].mxu1  ;;  %v701_v49 = vadd.f32 %v695_v45, %v2416_v36 }
 0x8ea   :  { %v703_v50 = vsel %vm45_vm0, %v701_v49, 0.0  ;;  %v702_v51 = vadd.f32 %v698_v48, %v2418_v37  ;;  %v2229_v37 = vld [vmem:[%s2808_s6] sm:$0xff]  }
 0x8eb   :  { %704 = vadd.xlane.f32.xlu1 %v703_v50  ;;  %2086 = vmatpush3.bf16.msra.mxu0 %v2229_v37 }
 0x8ec   :  { %v706_v53 = vsel %vm45_vm0, %v702_v51, 0.0  ;;  %2087 = vmatprep.subr.bf16.mxu0 %v2305_v15 }
 0x8ed   :  { %707 = vadd.xlane.f32.xlu0 %v706_v53 }
 0x8ef   :  { %2088 = vmatpush3.bf16.msra.mxu0 %v2230_v0 }
 0x8f0   :  { %2105 = vmatprep.subr.bf16.mxu0 %v2305_v15 }
 0x978   :  { %v705_v55 = vpop.xlane.xlu1 %704 }
 0x979   :  { %v709_v56 = vmul.f32 0.03125, %v705_v55 }
 0x97a   :  { %v708_v57 = vpop.xlane.xlu0 %707 }
 0x97b   :  { %v711_v58 = vsub.f32 %v701_v49, %v709_v56  ;;  %v710_v59 = vmul.f32 0.03125, %v708_v57 }
 0x97d   :  { %v712_v60 = vsub.f32 %v702_v51, %v710_v59  ;;  %v713_v61 = vmul.f32 %v711_v58, %v711_v58 }
 0x97f   :  { %v715_v62 = vsel %vm45_vm0, %v713_v61, 0.0  ;;  %v714_v63 = vmul.f32 %v712_v60, %v712_v60 }
 0x980   :  { %716 = vadd.xlane.f32.xlu0 %v715_v62 }
 0x981   :  { %v718_v36 = vsel %vm45_vm0, %v714_v63, 0.0 }
 0x984   :  { %719 = vadd.xlane.f32.xlu0 %v718_v36 }
 0xa0d   :  { %v717_v1 = vpop.xlane.xlu0 %716 }
 0xa0e   :  { %v721_v2 = vmul.f32 0.03125, %v717_v1 }
 0xa10   :  { %v723_v3 = vadd.f32 1e-12, %v721_v2 }
 0xa11   :  { %v720_v4 = vpop.xlane.xlu0 %719 }
 0xa12   :  { %2265 = vrsqrt.f32 %v723_v3  ;;  %v722_v5 = vmul.f32 0.03125, %v720_v4 }
 0xa14   :  { %v724_v6 = vadd.f32 1e-12, %v722_v5 }
 0xa16   :  { %2267 = vrsqrt.f32 %v724_v6 }
 0xa1c   :  { %v2266_v47 = vpop.eup %2265 }
 0xa1d   :  { %v727_v8 = vmul.f32 %v2266_v47, %v711_v58  ;;  %v825_v58 = vsub.s32 3, %v2403_v24 }
 0xa1f   :  { %v733_v11 = vmul.f32 %v732_v7, %v727_v8  ;;  %v826_v59 = vrot.slane %v2539_v41, %v825_v58 }
 0xa20   :  { %v2268_v10 = vpop.eup %2267 }
 0xa21   :  { %v728_v12 = vmul.f32 %v2268_v10, %v712_v60  ;;  %v739_v16 = vadd.f32 %v738_v13, %v733_v11 }
 0xa23   :  { %v734_v14 = vmul.f32 %v732_v7, %v728_v12 }
 0xa25   :  { %v740_v44 = vadd.f32 %v738_v13, %v734_v14  ;;  %v2235_v14 = vld [vmem:[%s2802_s3 + $0x10] sm:$0xff]  }
 0xa27   :  { %v741_v17 = vpack.c.bf16 %v740_v44, %v739_v16 }
 0xa29   :  { %2090 = vmatmul.mubr.msk.bf16.vlgmr.msra.gmra.mrb[16].mxu0 %vm45_vm0, %v741_v17 }
 0xa2a   :  { %2109 = vmatprep.mubr.msk.bf16.mxu0 %vm2306_vm1, %v2305_v15  ;;  %2106 = vmatpush3.bf16.msra.mxu0 %v2235_v14 }
 0xa2b   :  { %2107 = vmatprep.subr.bf16.mxu0 %v2305_v15 }
 0xafc   :  { %v797_v23 = vpop.f32.mrb[16].mxu0 }
 0xafd   :  { %v798_v26 = vadd.f32 %v1892_v22, %v797_v23  ;;  %v2091_v27 = vpop.f32.mrb[17].mxu0 }
 0xafe   :  { %v800_v28 = vpop.f32.mrb[18].mxu0 }
 0xaff   :  { %v806_v29 = vmul.f32 0.044715, %v798_v26  ;;  %v801_v31 = vadd.f32 %v1892_v22, %v800_v28  ;;  %v2092_v32 = vpop.f32.mrb[19].mxu0  ;;  %v804_v50 = vmul.f32 0.5, %v798_v26  ;;  %v926_v22 = vsub.s32 4, %v2403_v24 }
 0xb01   :  { %v808_v33 = vmul.f32 %v806_v29, %v798_v26  ;;  %v807_v35 = vmul.f32 0.044715, %v801_v31  ;;  %v805_v51 = vmul.f32 0.5, %v801_v31  ;;  %v927_v23 = vrot.slane %v2539_v41, %v926_v22 }
 0xb03   :  { %v810_v38 = vmul.f32 %v808_v33, %v798_v26  ;;  %v809_v40 = vmul.f32 %v807_v35, %v801_v31 }
 0xb05   :  { %v812_v42 = vadd.f32 %v810_v38, %v798_v26  ;;  %v811_v43 = vmul.f32 %v809_v40, %v801_v31  ;;  %v932_v26 = vsub.s32 5, %v2403_v24 }
 0xb07   :  { %v814_v45 = vmul.f32 0.7978846, %v812_v42  ;;  %v813_v39 = vadd.f32 %v811_v43, %v801_v31  ;;  %v933_v33 = vrot.slane %v2539_v41, %v932_v26  ;;  %v1924_v43 = vld [vmem:[%s2804_s4 + $0x1] ss:$0 sm:$0xff] }
 0xb09   :  { %2269 = vtanh.f32 %v814_v45  ;;  %v815_v46 = vmul.f32 0.7978846, %v813_v39 }
 0xb0b   :  { %2271 = vtanh.f32 %v815_v46 }
 0xb13   :  { %v2270_v48 = vpop.eup %2269 }
 0xb14   :  { %v818_v34 = vadd.f32 1.0, %v2270_v48 }
 0xb15   :  { %v2272_v49 = vpop.eup %2271 }
 0xb16   :  { %v819_v53 = vadd.f32 1.0, %v2272_v49  ;;  %v820_v55 = vmul.f32 %v818_v34, %v804_v50 }
 0xb18   :  { %v821_v56 = vmul.f32 %v819_v53, %v805_v51 }
 0xb1a   :  { %v822_v57 = vpack.c.bf16 %v821_v56, %v820_v55 }
 0xb1c   :  { %2102 = vmatmul.mubr.msk.bf16.vlgmr.msra.gmra.mrb[24].mxu1 %vm851_vm5, %v822_v57 }
 0xb1d   :  { %2121 = vmatprep.mubr.msk.bf16.mxu1 %vm2306_vm1, %v2305_v15 }
 0xbef   :  { %v889_v60 = vpop.f32.mrb[24].mxu1 }
 0xbf0   :  { %v890_v61 = vadd.f32 %v889_v60, %v826_v59  ;;  %v2103_v62 = vpop.f32.mrb[25].mxu1 }
 0xbf1   :  { %v892_v63 = vpop.f32.mrb[26].mxu1 }
 0xbf2   :  { %v893_v36 = vadd.f32 %v892_v63, %v826_v59  ;;  %v2104_v37 = vpop.f32.mrb[27].mxu1  ;;  %v896_v0 = vadd.f32 %v890_v61, %v739_v16  ;;  %v2236_v16 = vld [vmem:[%s2802_s3 + $0x18] sm:$0xff]  }
 0xbf3   :  { %2108 = vmatpush3.bf16.msra.mxu0 %v2236_v16 }
 0xbf4   :  { %v898_v1 = vsel %vm45_vm0, %v896_v0, 0.0  ;;  %v897_v2 = vadd.f32 %v893_v36, %v740_v44  ;;  %2113 = vmatprep.subr.bf16.mxu0 %v2305_v15 }
 0xbf5   :  { %899 = vadd.xlane.f32.xlu1 %v898_v1 }
 0xbf6   :  { %v901_v3 = vsel %vm45_vm0, %v897_v2, 0.0 }
 0xbf7   :  { %902 = vadd.xlane.f32.xlu0 %v901_v3 }
 0xc82   :  { %v900_v4 = vpop.xlane.xlu1 %899 }
 0xc83   :  { %v904_v5 = vmul.f32 0.03125, %v900_v4 }
 0xc84   :  { %v903_v6 = vpop.xlane.xlu0 %902 }
 0xc85   :  { %v906_v47 = vsub.f32 %v896_v0, %v904_v5  ;;  %v905_v7 = vmul.f32 0.03125, %v903_v6 }
 0xc87   :  { %v907_v8 = vsub.f32 %v897_v2, %v905_v7  ;;  %v908_v10 = vmul.f32 %v906_v47, %v906_v47 }
 0xc89   :  { %v910_v11 = vsel %vm45_vm0, %v908_v10, 0.0  ;;  %v909_v12 = vmul.f32 %v907_v8, %v907_v8 }
 0xc8a   :  { %911 = vadd.xlane.f32.xlu1 %v910_v11 }
 0xc8b   :  { %v913_v13 = vsel %vm45_vm0, %v909_v12, 0.0 }
 0xc8c   :  { %914 = vadd.xlane.f32.xlu0 %v913_v13 }
 0xd17   :  { %v912_v44 = vpop.xlane.xlu1 %911 }
 0xd18   :  { %v916_v17 = vmul.f32 0.03125, %v912_v44 }
 0xd19   :  { %v915_v18 = vpop.xlane.xlu0 %914 }
 0xd1a   :  { %v918_v19 = vadd.f32 1e-12, %v916_v17  ;;  %v917_v20 = vmul.f32 0.03125, %v915_v18 }
 0xd1c   :  { %2273 = vrsqrt.f32 %v918_v19  ;;  %v919_v21 = vadd.f32 1e-12, %v917_v20 }
 0xd1e   :  { %2275 = vrsqrt.f32 %v919_v21 }
 0xd26   :  { %v2274_v27 = vpop.eup %2273 }
 0xd27   :  { %v922_v28 = vmul.f32 %v2274_v27, %v906_v47 }
 0xd28   :  { %v2276_v29 = vpop.eup %2275 }
 0xd29   :  { %v928_v31 = vmul.f32 %v927_v23, %v922_v28  ;;  %v923_v32 = vmul.f32 %v2276_v29, %v907_v8 }
 0xd2b   :  { %v929_v35 = vmul.f32 %v927_v23, %v923_v32  ;;  %v2612_v38 = vadd.f32 %v933_v33, %v928_v31 }
 0xd2d   :  { %v2614_v40 = vadd.f32 %v933_v33, %v929_v35 }
 0xd2f   :  { %v966_v42 = vpack.c.bf16 %v2614_v40, %v2612_v38 }
 0xd31   :  { %2110 = vmatmul.mubr.msk.bf16.vlgmr.msra.gmra.mrb[20].mxu0 %vm45_vm0, %v966_v42 }
 0xd32   :  { %2115 = vmatprep.mubr.msk.bf16.mxu0 %vm2306_vm1, %v2305_v15 }
 0xe04   :  { %v1022_v45 = vpop.f32.mrb[20].mxu0 }
 0xe05   :  { %v1023_v39 = vadd.f32 %v1924_v43, %v1022_v45  ;;  %v2111_v41 = vpop.f32.mrb[21].mxu0 }
 0xe06   :  { %v1025_v46 = vpop.f32.mrb[22].mxu0 }
 0xe07   :  { %v2624_v48 = vpack.c.bf16 %v1023_v39, %v1023_v39  ;;  %v1026_v34 = vadd.f32 %v1924_v43, %v1025_v46  ;;  %v2112_v49 = vpop.f32.mrb[23].mxu0 }
 0xe09   :  { %v2626_v50 = vpack.c.bf16 %v1026_v34, %v1026_v34  ;;  %1035 = vrot.lane.b32.xlu1 %v2624_v48, %s2307_s13 }
 0xe0b   :  { %1083 = vrot.lane.b32.xlu0 %v2626_v50, %s2307_s13 }
 0xe7b   :  { %v1036_v51 = vpop.permute.xlu1 %1035 }
 0xe7c   :  { %v1041_v53 = vsel %vm193_vm2, %v1036_v51, 0 }
 0xe7d   :  { %2114 = vmatpush3.bf16.xpose.msra.mxu0 %v1041_v53  ;;  %v1084_v55 = vpop.permute.xlu0 %1083 }
 0xe7e   :  { %v1089_v56 = vsel %vm193_vm2, %v1084_v55, 0  ;;  %2125 = vmatprep.subr.bf16.mxu0 %v2305_v15 }
 0xe7f   :  { %2120 = vmatpush3.bf16.xpose.msra.mxu1 %v1089_v56 }
 0xe80   :  { %2131 = vmatprep.subr.bf16.mxu1 %v2305_v15 }
 0xe84   :  { %2116 = vmatmul.mubr.msk.bf16.vlgmr.msra.gmra.mrb[24].mxu0 %vm193_vm2, %v2624_v48 }
 0xe85   :  { %2127 = vmatprep.mubr.msk.bf16.mxu0 %vm2306_vm1, %v2305_v15 }
 0xe86   :  { %2122 = vmatmul.mubr.msk.bf16.vlgmr.msra.gmra.mrb[28].mxu1 %vm193_vm2, %v2626_v50 }
 0xe87   :  { %2133 = vmatprep.mubr.msk.bf16.mxu1 %vm2306_vm1, %v2305_v15 }
 0xf57   :  { %v1077_v57 = vpop.f32.mrb[24].mxu0 }
 0xf58   :  { %v1078_v59 = vadd.f32 %v2451_v52, %v1077_v57  ;;  %v2117_v60 = vpop.f32.mrb[25].mxu0 }
 0xf59   :  { %v1080_v61 = vpop.f32.mrb[26].mxu0  ;;  %v1125_v62 = vpop.f32.mrb[28].mxu1 }
 0xf5a   :  { %v1126_v63 = vadd.f32 %v2456_v54, %v1125_v62  ;;  %v2118_v36 = vpop.f32.mrb[27].mxu0  ;;  %v2123_v37 = vpop.f32.mrb[29].mxu1  ;;  %v1131_v0 = vsel %vm288_vm3, %v1078_v59, -inf }
 0xf5b   :  { %1132 = vmax.xlane.f32.xlu1 %v1131_v0  ;;  %v1128_v1 = vpop.f32.mrb[30].mxu1 }
 0xf5c   :  { %v2124_v2 = vpop.f32.mrb[31].mxu1  ;;  %v1134_v3 = vsel %vm288_vm3, %v1126_v63, -inf }
 0xf5d   :  { %1135 = vmax.xlane.f32.xlu0 %v1134_v3 }
 0xf6c   :  { %1155 = vrot.lane.b32.xlu1 %v2624_v48, %s2308_s1 }
 0xfe8   :  { %v1133_v4 = vpop.xlane.xlu1 %1132 }
 0xfe9   :  { %v1137_v5 = vsub.f32 %v1078_v59, %v1133_v4 }
 0xfea   :  { %v1136_v6 = vpop.xlane.xlu0 %1135 }
 0xfeb   :  { %v1139_v47 = vmul.f32 1.442695, %v1137_v5  ;;  %v1138_v7 = vsub.f32 %v1126_v63, %v1136_v6 }
 0xfec   :  { %v1156_v8 = vpop.permute.xlu1 %1155 }
 0xfed   :  { %2277 = vpow2.f32 %v1139_v47  ;;  %v1141_v10 = vmul.f32 1.442695, %v1138_v7  ;;  %v1161_v11 = vsel %vm318_vm4, %v1156_v8, 0 }
 0xfee   :  { %2126 = vmatpush3.bf16.msra.mxu0 %v1161_v11 }
 0xfef   :  { %2279 = vpow2.f32 %v1141_v10  ;;  %2137 = vmatprep.subr.bf16.mxu0 %v2305_v15 }
 0xff7   :  { %v2278_v12 = vpop.eup %2277 }
 0xff8   :  { %v1143_v13 = vsel %vm288_vm3, %v2278_v12, 0.0 }
 0xff9   :  { %v2280_v14 = vpop.eup %2279  ;;  %1144 = vadd.xlane.f32.xlu1 %v1143_v13 }
 0xffa   :  { %v1146_v16 = vsel %vm288_vm3, %v2280_v14, 0.0 }
 0xffb   :  { %1147 = vadd.xlane.f32.xlu0 %v1146_v16 }
0x100a   :  { %1253 = vrot.lane.b32.xlu1 %v2624_v48, %s2309_s18 }
0x100e   :  { %1303 = vrot.lane.b32.xlu1 %v2626_v50, %s2309_s18 }
0x1011   :  { %1203 = vrot.lane.b32.xlu0 %v2626_v50, %s2308_s1 }
0x1012   :  { %1251 = vrot.lane.b32.xlu1 %v2624_v48, %s2310_s19 }
0x1015   :  { %1301 = vrot.lane.b32.xlu0 %v2626_v50, %s2310_s19 }
0x1086   :  { %v1145_v44 = vpop.xlane.xlu1 %1144 }
0x1087   :  { %2281 = vrcp.f32 %v1145_v44 }
0x1088   :  { %v1148_v17 = vpop.xlane.xlu0 %1147 }
0x1089   :  { %2283 = vrcp.f32 %v1148_v17 }
0x108a   :  { %v1254_v20 = vpop.permute.xlu1 %1253 }
0x108b   :  { %v1259_v32 = vsel %vm193_vm2, %v1254_v20, 0  ;;  %v2237_v20 = vld [vmem:[%s2806_s5 + $0x10] sm:$0xff]  }
0x108c   :  { %v1204_v18 = vpop.permute.xlu0 %1203 }
0x108d   :  { %v1209_v19 = vsel %vm318_vm4, %v1204_v18, 0 }
0x108e   :  { %2132 = vmatpush3.bf16.msra.mxu1 %v1209_v19  ;;  %v1304_v31 = vpop.permute.xlu1 %1303 }
0x108f   :  { %2143 = vmatprep.subr.bf16.mxu1 %v2305_v15  ;;  %v1309_v35 = vsel %vm193_vm2, %v1304_v31, 0 }
0x1090   :  { %v1302_v43 = vpop.permute.xlu0 %1301 }
0x1091   :  { %v2282_v21 = vpop.eup %2281 }
0x1092   :  { %v1151_v23 = vmul.f32 %v2282_v21, %v2278_v12  ;;  %v1252_v42 = vpop.permute.xlu1 %1251  ;;  %v2238_v21 = vld [vmem:[%s2806_s5 + $0x18] sm:$0xff]  }
0x1093   :  { %v2284_v27 = vpop.eup %2283 }
0x1094   :  { %v1152_v28 = vmul.f32 %v2284_v27, %v2280_v14  ;;  %v1153_v29 = vpack.c.bf16 %v1151_v23, %v1151_v23 }
0x1096   :  { %2128 = vmatmul.mubr.msk.bf16.vlgmr.msra.gmra.mrb[28].mxu0 %vm288_vm3, %v1153_v29  ;;  %v1154_v33 = vpack.c.bf16 %v1152_v28, %v1152_v28 }
0x1097   :  { %2138 = vmatpush3.bf16.xpose.msra.mxu0 %v1259_v32  ;;  %2139 = vmatprep.mubr.msk.bf16.mxu0 %vm2306_vm1, %v2305_v15 }
0x1098   :  { %2134 = vmatmul.mubr.msk.bf16.vlgmr.msra.gmra.mrb[32].mxu1 %vm288_vm3, %v1154_v33  ;;  %2149 = vmatprep.subr.bf16.mxu0 %v2305_v15 }
0x1099   :  { %2144 = vmatpush3.bf16.xpose.msra.mxu1 %v1309_v35  ;;  %2145 = vmatprep.mubr.msk.bf16.mxu1 %vm2306_vm1, %v2305_v15 }
0x109a   :  { %2155 = vmatprep.subr.bf16.mxu1 %v2305_v15 }
0x109e   :  { %2140 = vmatmul.mubr.msk.bf16.vlgmr.msra.gmra.mrb[32].mxu0 %vm193_vm2, %v1252_v42 }
0x109f   :  { %2151 = vmatprep.mubr.msk.bf16.mxu0 %vm2306_vm1, %v2305_v15 }
0x10a0   :  { %2146 = vmatmul.mubr.msk.bf16.vlgmr.msra.gmra.mrb[36].mxu1 %vm193_vm2, %v1302_v43 }
0x10a1   :  { %2157 = vmatprep.mubr.msk.bf16.mxu1 %vm2306_vm1, %v2305_v15 }
0x1169   :  { %v2682_v45 = vpop.f32.mrb[28].mxu0 }
0x116a   :  { %v2129_v39 = vpop.f32.mrb[29].mxu0 }
0x116b   :  { %v1200_v41 = vpop.f32.mrb[30].mxu0  ;;  %v2684_v46 = vpop.f32.mrb[32].mxu1 }
0x116c   :  { %v2130_v34 = vpop.f32.mrb[31].mxu0  ;;  %v2135_v49 = vpop.f32.mrb[33].mxu1 }
0x116d   :  { %v1248_v51 = vpop.f32.mrb[34].mxu1 }
0x116e   :  { %v2136_v53 = vpop.f32.mrb[35].mxu1 }
0x116f   :  { %v2725_v53 = vld [vmem:[%s2807_s9 + $0x8] sm:$0x3f] }
0x1171   :  { %v1295_v55 = vpop.f32.mrb[32].mxu0 }
0x1172   :  { %v1296_v56 = vadd.f32 %v2451_v52, %v1295_v55  ;;  %v2141_v57 = vpop.f32.mrb[33].mxu0  ;;  %v1485_v55 = vrot.slane %v2725_v53, %v2406_v25 }
0x1173   :  { %v1298_v59 = vpop.f32.mrb[34].mxu0  ;;  %v1345_v60 = vpop.f32.mrb[36].mxu1 }
0x1174   :  { %v1346_v61 = vadd.f32 %v2456_v54, %v1345_v60  ;;  %v2142_v62 = vpop.f32.mrb[35].mxu0  ;;  %v2147_v63 = vpop.f32.mrb[37].mxu1  ;;  %v1351_v36 = vsel %vm288_vm3, %v1296_v56, -inf }
0x1175   :  { %1352 = vmax.xlane.f32.xlu1 %v1351_v36  ;;  %v1348_v37 = vpop.f32.mrb[38].mxu1 }
0x1176   :  { %v2148_v0 = vpop.f32.mrb[39].mxu1  ;;  %v1354_v1 = vsel %vm288_vm3, %v1346_v61, -inf }
0x1177   :  { %1355 = vmax.xlane.f32.xlu0 %v1354_v1 }
0x1186   :  { %1375 = vrot.lane.b32.xlu1 %v2624_v48, %s2311_s20 }
0x1202   :  { %v1353_v2 = vpop.xlane.xlu1 %1352 }
0x1203   :  { %v1357_v52 = vsub.f32 %v1296_v56, %v1353_v2 }
0x1204   :  { %v1356_v3 = vpop.xlane.xlu0 %1355 }
0x1205   :  { %v1359_v4 = vmul.f32 1.442695, %v1357_v52  ;;  %v1358_v5 = vsub.f32 %v1346_v61, %v1356_v3 }
0x1206   :  { %v1376_v6 = vpop.permute.xlu1 %1375 }
0x1207   :  { %2285 = vpow2.f32 %v1359_v4  ;;  %v1361_v54 = vmul.f32 1.442695, %v1358_v5  ;;  %v1381_v47 = vsel %vm318_vm4, %v1376_v6, 0  ;;  %v2240_v6 = vld [vmem:[%s2808_s6 + $0x18] sm:$0xff]  }
0x1208   :  { %2150 = vmatpush3.bf16.msra.mxu0 %v1381_v47 }
0x1209   :  { %2287 = vpow2.f32 %v1361_v54  ;;  %2161 = vmatprep.subr.bf16.mxu0 %v2305_v15 }
0x1211   :  { %v2286_v7 = vpop.eup %2285 }
0x1212   :  { %v1363_v8 = vsel %vm288_vm3, %v2286_v7, 0.0 }
0x1213   :  { %v2288_v10 = vpop.eup %2287  ;;  %1364 = vadd.xlane.f32.xlu0 %v1363_v8 }
0x1214   :  { %v1366_v48 = vsel %vm288_vm3, %v2288_v10, 0.0 }
0x1217   :  { %1367 = vadd.xlane.f32.xlu0 %v1366_v48 }
0x122d   :  { %1423 = vrot.lane.b32.xlu0 %v2626_v50, %s2311_s20 }
0x12a0   :  { %v1365_v11 = vpop.xlane.xlu0 %1364 }
0x12a1   :  { %2289 = vrcp.f32 %v1365_v11  ;;  %v1573_v11 = vrot.slane %v2725_v53, %v2413_v30  ;;  %v2241_v30 = vld [vmem:[%s2809_s7 + $0x20] sm:$0xff]  }
0x12a4   :  { %v1368_v12 = vpop.xlane.xlu0 %1367 }
0x12a5   :  { %2291 = vrcp.f32 %v1368_v12 }
0x12a8   :  { %v1424_v13 = vpop.permute.xlu0 %1423 }
0x12a9   :  { %v1429_v14 = vsel %vm318_vm4, %v1424_v13, 0 }
0x12aa   :  { %2156 = vmatpush3.bf16.msra.mxu1 %v1429_v14 }
0x12ab   :  { %v2290_v16 = vpop.eup %2289  ;;  %2169 = vmatprep.subr.bf16.mxu1 %v2305_v15 }
0x12ac   :  { %v1371_v44 = vmul.f32 %v2290_v16, %v2286_v7 }
0x12ae   :  { %v1373_v17 = vpack.c.bf16 %v1371_v44, %v1371_v44 }
0x12af   :  { %v2292_v18 = vpop.eup %2291 }
0x12b0   :  { %v1372_v19 = vmul.f32 %v2292_v18, %v2288_v10  ;;  %2152 = vmatmul.mubr.msk.bf16.vlgmr.msra.gmra.mrb[36].mxu0 %vm288_vm3, %v1373_v17  ;;  %v1579_v17 = vrot.slane %v2725_v53, %v737_v9  ;;  %v2243_v9 = vld [vmem:[%s2809_s7 + $0x30] sm:$0xff]  }
0x12b1   :  { %2165 = vmatprep.mubr.msk.bf16.mxu0 %vm2306_vm1, %v2305_v15  ;;  %2162 = vmatpush3.bf16.msra.mxu0 %v2237_v20 }
0x12b2   :  { %v1374_v50 = vpack.c.bf16 %v1372_v19, %v1372_v19  ;;  %2163 = vmatprep.subr.bf16.mxu0 %v2305_v15 }
0x12b4   :  { %2158 = vmatmul.mubr.msk.bf16.vlgmr.msra.gmra.mrb[40].mxu1 %vm288_vm3, %v1374_v50 }
0x12b5   :  { %2173 = vmatprep.mubr.msk.bf16.mxu1 %vm2306_vm1, %v2305_v15  ;;  %2164 = vmatpush3.bf16.msra.mxu0 %v2238_v21  ;;  %v2242_v21 = vld [vmem:[%s2809_s7 + $0x28] sm:$0xff]  }
0x12b6   :  { %2177 = vmatprep.subr.bf16.mxu0 %v2305_v15 }
0x1383   :  { %v1417_v23 = vpop.f32.mrb[36].mxu0 }
0x1384   :  { %v2153_v27 = vpop.f32.mrb[37].mxu0 }
0x1385   :  { %v1420_v28 = vpop.f32.mrb[38].mxu0  ;;  %v1941_v27 = vld [vmem:[%s2810_s8 + $0x1] ss:$0 sm:$0xff] }
0x1386   :  { %v2154_v29 = vpop.f32.mrb[39].mxu0 }
0x1387   :  { %v1465_v31 = vpop.f32.mrb[40].mxu1 }
0x1388   :  { %v2220_v32 = vpack.i.bf16 %v1465_v31, %v1417_v23  ;;  %v2159_v33 = vpop.f32.mrb[41].mxu1  ;;  %v2244_v23 = vld [vmem:[%s2809_s7 + $0x38] sm:$0xff]  }
0x1389   :  { %v1468_v35 = vpop.f32.mrb[42].mxu1 }
0x138a   :  { %2221 = vrot.lane.b32.xlu1 %v2220_v32, %s2312_s0  ;;  %v2160_v42 = vpop.f32.mrb[43].mxu1 }
0x13fc   :  { %v2222_v43 = vpop.permute.xlu1 %2221 }
0x13fd   :  { %v2224_v39 = vunpack.i.h.bf16 %v2222_v43  ;;  %v2223_v41 = vunpack.i.l.bf16 %v2222_v43 }
0x13ff   :  { %v1480_v34 = vsel %vm193_vm2, %v2684_v46, %v2224_v39  ;;  %v1479_v49 = vsel %vm193_vm2, %v2682_v45, %v2223_v41 }
0x1400   :  { %v1481_v51 = vpack.c.bf16 %v1480_v34, %v1479_v49 }
0x1402   :  { %2166 = vmatmul.mubr.msk.bf16.vlgmr.msra.gmra.mrb[40].mxu0 %vm45_vm0, %v1481_v51 }
0x1403   :  { %2185 = vmatprep.mubr.msk.bf16.mxu0 %vm2306_vm1, %v2305_v15  ;;  %2178 = vmatpush3.bf16.msra.mxu0 %v2241_v30 }
0x1404   :  { %2179 = vmatprep.subr.bf16.mxu0 %v2305_v15 }
0x1407   :  { %2180 = vmatpush3.bf16.msra.mxu0 %v2242_v21 }
0x1408   :  { %2181 = vmatprep.subr.bf16.mxu0 %v2305_v15 }
0x140b   :  { %2182 = vmatpush3.bf16.msra.mxu0 %v2243_v9 }
0x140c   :  { %2183 = vmatprep.subr.bf16.mxu0 %v2305_v15 }
0x140f   :  { %2184 = vmatpush3.bf16.msra.mxu0 %v2244_v23 }
0x14d5   :  { %v1535_v56 = vpop.f32.mrb[40].mxu0 }
0x14d6   :  { %v1536_v57 = vadd.f32 %v1535_v56, %v1485_v55  ;;  %v2167_v46 = vpop.f32.mrb[41].mxu0 }
0x14d7   :  { %v1538_v59 = vpop.f32.mrb[42].mxu0 }
0x14d8   :  { %v1539_v60 = vadd.f32 %v1538_v59, %v1485_v55  ;;  %v2168_v45 = vpop.f32.mrb[43].mxu0  ;;  %v1542_v61 = vadd.f32 %v1536_v57, %v2612_v38 }
0x14da   :  { %v1544_v62 = vsel %vm45_vm0, %v1542_v61, 0.0  ;;  %v1543_v63 = vadd.f32 %v1539_v60, %v2614_v40  ;;  %v2239_v40 = vld [vmem:[%s2808_s6 + $0x10] sm:$0xff]  }
0x14db   :  { %1545 = vadd.xlane.f32.xlu1 %v1544_v62  ;;  %2170 = vmatpush3.bf16.msra.mxu1 %v2239_v40 }
0x14dc   :  { %v1547_v36 = vsel %vm45_vm0, %v1543_v63, 0.0  ;;  %2171 = vmatprep.subr.bf16.mxu1 %v2305_v15 }
0x14dd   :  { %1548 = vadd.xlane.f32.xlu0 %v1547_v36 }
0x14df   :  { %2172 = vmatpush3.bf16.msra.mxu1 %v2240_v6 }
0x1568   :  { %v1546_v37 = vpop.xlane.xlu1 %1545 }
0x1569   :  { %v1550_v0 = vmul.f32 0.03125, %v1546_v37  ;;  %v1667_v37 = vrot.slane %v2725_v53, %v825_v58 }
0x156a   :  { %v1549_v1 = vpop.xlane.xlu0 %1548 }
0x156b   :  { %v1552_v25 = vsub.f32 %v1542_v61, %v1550_v0  ;;  %v1551_v2 = vmul.f32 0.03125, %v1549_v1 }
0x156d   :  { %v1553_v52 = vsub.f32 %v1543_v63, %v1551_v2  ;;  %v1554_v3 = vmul.f32 %v1552_v25, %v1552_v25 }
0x156f   :  { %v1556_v4 = vsel %vm45_vm0, %v1554_v3, 0.0  ;;  %v1555_v5 = vmul.f32 %v1553_v52, %v1553_v52 }
0x1570   :  { %1557 = vadd.xlane.f32.xlu0 %v1556_v4 }
0x1571   :  { %v1559_v38 = vsel %vm45_vm0, %v1555_v5, 0.0 }
0x1572   :  { %1560 = vadd.xlane.f32.xlu1 %v1559_v38 }
0x15fd   :  { %v1558_v54 = vpop.xlane.xlu0 %1557 }
0x15fe   :  { %v1562_v47 = vmul.f32 0.03125, %v1558_v54 }
0x15ff   :  { %v1561_v7 = vpop.xlane.xlu1 %1560 }
0x1600   :  { %v1564_v8 = vadd.f32 1e-12, %v1562_v47  ;;  %v1563_v10 = vmul.f32 0.03125, %v1561_v7 }
0x1602   :  { %2293 = vrsqrt.f32 %v1564_v8  ;;  %v1565_v48 = vadd.f32 1e-12, %v1563_v10 }
0x1604   :  { %2295 = vrsqrt.f32 %v1565_v48 }
0x160c   :  { %v2294_v12 = vpop.eup %2293 }
0x160d   :  { %v1568_v13 = vmul.f32 %v2294_v12, %v1552_v25 }
0x160e   :  { %v2296_v14 = vpop.eup %2295 }
0x160f   :  { %v1574_v16 = vmul.f32 %v1573_v11, %v1568_v13  ;;  %v1569_v44 = vmul.f32 %v2296_v14, %v1553_v52  ;;  %v2313_v13 = vmov 0.0|0.0   ;;  %v1784_v14 = vld [vmem:[%s2811_s10] sm:$0xff] }
0x1610   :  { %2200 = vmatprep.subr.bf16.mxu1 %v2313_v13 }
0x1611   :  { %v1575_v18 = vmul.f32 %v1573_v11, %v1569_v44  ;;  %v1580_v19 = vadd.f32 %v1579_v17, %v1574_v16  ;;  %v1785_v16 = vld [vmem:[%s2811_s10 + $0x8] sm:$0xff]  ;;  %v1786_v44 = vld [vmem:[%s2811_s10 + $0x10] sm:$0xff] }
0x1613   :  { %v1581_v50 = vadd.f32 %v1579_v17, %v1575_v18  ;;  %v2201_v17 = vpack.c.bf16 %v1785_v16, %v1784_v14  ;;  %v1787_v18 = vld [vmem:[%s2811_s10 + $0x18] sm:$0xff] }
0x1615   :  { %v1582_v20 = vpack.c.bf16 %v1581_v50, %v1580_v19 }
0x1617   :  { %2174 = vmatmul.mubr.msk.bf16.vlgmr.msra.gmra.mrb[44].mxu1 %vm45_vm0, %v1582_v20 }
0x1618   :  { %2197 = vmatprep.mubr.msk.f32.mxu1 %vm2306_vm1, %v2305_v15  ;;  %2202 = vmatpush3.bf16.msra.mxu1 %v2201_v17 }
0x1619   :  { %2203 = vmatprep.subr.bf16.mxu1 %v2313_v13 }
0x16ea   :  { %v1638_v28 = vpop.f32.mrb[44].mxu1 }
0x16eb   :  { %v1639_v29 = vadd.f32 %v1941_v27, %v1638_v28  ;;  %v2175_v31 = vpop.f32.mrb[45].mxu1 }
0x16ec   :  { %v1641_v32 = vpop.f32.mrb[46].mxu1 }
0x16ed   :  { %v1647_v33 = vmul.f32 0.044715, %v1639_v29  ;;  %v1642_v35 = vadd.f32 %v1941_v27, %v1641_v32  ;;  %v2176_v42 = vpop.f32.mrb[47].mxu1  ;;  %v1645_v60 = vmul.f32 0.5, %v1639_v29 }
0x16ee   :  { %v1773_v42 = vrot.slane %v2725_v53, %v932_v26 }
0x16ef   :  { %v1649_v43 = vmul.f32 %v1647_v33, %v1639_v29  ;;  %v1648_v39 = vmul.f32 0.044715, %v1642_v35  ;;  %v1646_v45 = vmul.f32 0.5, %v1642_v35 }
0x16f1   :  { %v1651_v41 = vmul.f32 %v1649_v43, %v1639_v29  ;;  %v1650_v34 = vmul.f32 %v1648_v39, %v1642_v35 }
0x16f3   :  { %v1653_v49 = vadd.f32 %v1651_v41, %v1639_v29  ;;  %v1652_v51 = vmul.f32 %v1650_v34, %v1642_v35  ;;  %v1767_v29 = vrot.slane %v2725_v53, %v926_v22  ;;  %v1950_v22 = vld [vmem:[%s2812_s11] ss:$0 sm:$0xff] }
0x16f5   :  { %v1655_v55 = vmul.f32 0.7978846, %v1653_v49  ;;  %v1654_v15 = vadd.f32 %v1652_v51, %v1642_v35 }
0x16f7   :  { %2297 = vtanh.f32 %v1655_v55  ;;  %v1656_v56 = vmul.f32 0.7978846, %v1654_v15 }
0x16f9   :  { %2299 = vtanh.f32 %v1656_v56 }
0x1701   :  { %v2298_v57 = vpop.eup %2297 }
0x1702   :  { %v1659_v46 = vadd.f32 1.0, %v2298_v57 }
0x1703   :  { %v2300_v59 = vpop.eup %2299 }
0x1704   :  { %v1660_v61 = vadd.f32 1.0, %v2300_v59  ;;  %v1661_v62 = vmul.f32 %v1659_v46, %v1645_v60 }
0x1706   :  { %v1662_v63 = vmul.f32 %v1660_v61, %v1646_v45 }
0x1708   :  { %v1663_v36 = vpack.c.bf16 %v1662_v63, %v1661_v62 }
0x170a   :  { %2186 = vmatmul.mubr.msk.bf16.vlgmr.msra.gmra.mrb[44].mxu0 %vm851_vm5, %v1663_v36 }
0x17dd   :  { %v1729_v0 = vpop.f32.mrb[44].mxu0 }
0x17de   :  { %v1730_v1 = vadd.f32 %v1729_v0, %v1667_v37  ;;  %v2187_v25 = vpop.f32.mrb[45].mxu0 }
0x17df   :  { %v1732_v2 = vpop.f32.mrb[46].mxu0 }
0x17e0   :  { %v1733_v52 = vadd.f32 %v1732_v2, %v1667_v37  ;;  %v2188_v3 = vpop.f32.mrb[47].mxu0  ;;  %v1736_v4 = vadd.f32 %v1730_v1, %v1580_v19  ;;  %v2204_v19 = vpack.c.bf16 %v1787_v18, %v1786_v44 }
0x17e2   :  { %v1738_v5 = vsel %vm45_vm0, %v1736_v4, 0.0  ;;  %v1737_v38 = vadd.f32 %v1733_v52, %v1581_v50  ;;  %2205 = vmatpush3.bf16.msra.mxu1 %v2204_v19 }
0x17e3   :  { %1739 = vadd.xlane.f32.xlu1 %v1738_v5 }
0x17e4   :  { %v1741_v40 = vsel %vm45_vm0, %v1737_v38, 0.0 }
0x17e5   :  { %1742 = vadd.xlane.f32.xlu0 %v1741_v40 }
0x1870   :  { %v1740_v6 = vpop.xlane.xlu1 %1739 }
0x1871   :  { %v1744_v54 = vmul.f32 0.03125, %v1740_v6 }
0x1872   :  { %v1743_v47 = vpop.xlane.xlu0 %1742 }
0x1873   :  { %v1746_v7 = vsub.f32 %v1736_v4, %v1744_v54  ;;  %v1745_v8 = vmul.f32 0.03125, %v1743_v47 }
0x1875   :  { %v1747_v58 = vsub.f32 %v1737_v38, %v1745_v8  ;;  %v1748_v10 = vmul.f32 %v1746_v7, %v1746_v7 }
0x1877   :  { %v1750_v48 = vsel %vm45_vm0, %v1748_v10, 0.0  ;;  %v1749_v11 = vmul.f32 %v1747_v58, %v1747_v58 }
0x1878   :  { %1751 = vadd.xlane.f32.xlu1 %v1750_v48 }
0x1879   :  { %v1753_v12 = vsel %vm45_vm0, %v1749_v11, 0.0 }
0x187a   :  { %1754 = vadd.xlane.f32.xlu0 %v1753_v12 }
0x1905   :  { %v1752_v50 = vpop.xlane.xlu1 %1751 }
0x1906   :  { %v1756_v20 = vmul.f32 0.03125, %v1752_v50 }
0x1907   :  { %v1755_v30 = vpop.xlane.xlu0 %1754 }
0x1908   :  { %v1758_v21 = vadd.f32 1e-12, %v1756_v20  ;;  %v1757_v9 = vmul.f32 0.03125, %v1755_v30 }
0x190a   :  { %2301 = vrsqrt.f32 %v1758_v21  ;;  %v1759_v23 = vadd.f32 1e-12, %v1757_v9 }
0x190c   :  { %2303 = vrsqrt.f32 %v1759_v23 }
0x1914   :  { %v2302_v27 = vpop.eup %2301 }
0x1915   :  { %v1762_v28 = vmul.f32 %v2302_v27, %v1746_v7 }
0x1916   :  { %v2304_v31 = vpop.eup %2303 }
0x1917   :  { %v1763_v32 = vmul.f32 %v2304_v31, %v1747_v58  ;;  %v1768_v33 = vmul.f32 %v1767_v29, %v1762_v28 }
0x1919   :  { %v1769_v35 = vmul.f32 %v1767_v29, %v1763_v32  ;;  %v1774_v39 = vadd.f32 %v1773_v42, %v1768_v33 }
0x191b   :  { %v1775_v43 = vadd.f32 %v1773_v42, %v1769_v35 }
0x191d   :  { %v1778_v41 = vrot.slane %v1775_v43, 7 }
0x191f   :  { %v1780_v34 = vsel %vm1779_vm6, %v1778_v41, %v1774_v39 }
0x1920   :  { %v1783_v49 = vsel %vm1782_vm7, %v1780_v34, 0.0 }
0x1921   :  { %2198 = vmatmul.mubr.msk.f32.vlgmr.msra.gmra.mrb[48].mxu1 %vm45_vm0, %v1783_v49 }
0x19f4   :  { %v1864_v51 = vpop.f32.mrb[48].mxu1 }
0x19f5   :  { %v1865_v55 = vadd.f32 %v1950_v22, %v1864_v51  ;;  %v2199_v15 = vpop.f32.mrb[49].mxu1 }
0x19f7   :  { %1868 = vst [vmem:[%s2813_s12] sm:$0xff] %v1865_v55 }

</bundles_post_ra>
